<compile_context>
chip_gen: v7x
topology: tpu7x:2x2x1
jax: 0.10.0
libtpu: 0.0.40
codegen_flags: <defaults>
</compile_context>

<pallas_src>
import functools

import jax
import jax.numpy as jnp
from jax.experimental import pallas as pl
from jax.experimental.pallas import tpu as pltpu


def _conv_bn_relu_kernel(x_ref, w_ref, bias_ref, o_ref, *, wp_pad, slope):
    # x_ref:    (Lp, Cin)          flattened zero-padded image of one batch element,
    #                              Lp = Hp_pad * wp_pad, wp_pad % 8 == 0 (VMEM-resident
    #                              across the row-block / cout-block grid axes)
    # w_ref:    (KH, KW, Cin, Ct)  conv weights with the BN scale pre-folded
    # bias_ref: (1, Ct)            folded BN bias (beta - mean * scale)
    # o_ref:    (TH, Wo, Ct)       one block of output rows / output channels
    KH, KW = w_ref.shape[0], w_ref.shape[1]
    TH, Wo, Ct = o_ref.shape
    M = TH * wp_pad

    r = pl.program_id(1)          # output-row block index
    row0 = r * TH

    acc = jnp.zeros((M, Ct), jnp.float32)
    for kh in range(KH):
        base = pl.multiple_of((row0 + kh) * wp_pad, 8)   # wp_pad % 8 == 0
        for kw in range(KW):
            # Row m of `patch` is x_pad[row0 + m//wp_pad + kh, m%wp_pad + kw]:
            # a pure leading-axis slice of the flattened image (no W-slice, no
            # width-mismatched reshape).  Wrap-around entries only affect output
            # columns >= Wo, which are dropped below.
            patch = x_ref[pl.ds(base + kw, M), :]                    # (M, Cin)
            acc += jnp.dot(patch, w_ref[kh, kw],
                           preferred_element_type=jnp.float32)       # MXU, f32 acc

    y = acc.reshape(TH, wp_pad, Ct)[:, :Wo, :]   # keep the valid output columns
    y = y + bias_ref[0]                          # folded BN bias
    y = jnp.where(y >= 0, y, slope * y)          # InPlaceABN leaky_relu(0.01)
    o_ref[...] = y.astype(o_ref.dtype)


def conv_bn_relu(x_nchw, weight_oihw, gamma, beta, running_mean, running_var,
                 *, stride=1, pad=1, eps=1e-5, slope=0.01,
                 block_rows=8, compute_dtype=jnp.bfloat16):
    """Fused Conv2d(bias=False, stride=1, padding=pad) + BN(eval stats) + leaky_relu."""
    # TODO(synk): stride > 1 not implemented (module default stride=1 is used).
    assert stride == 1, "only stride=1 implemented"
    N, Cin, H, W = x_nchw.shape
    Cout, Cin_w, KH, KW = weight_oihw.shape
    assert Cin_w == Cin

    Hp, Wp = H + 2 * pad, W + 2 * pad
    Ho, Wo = Hp - KH + 1, Wp - KW + 1

    # Pad W up to a sublane (8) multiple so in-kernel flatten/reshape are views, and add
    # one extra zero row so the flattened tap slices never run past the end of the image.
    Wp_pad = ((Wp + 7) // 8) * 8
    Hp_pad = Hp + 1
    Lp = Hp_pad * Wp_pad

    # ---- BN folding (exact): scale goes into the weights, only bias stays in-kernel ----
    scale = gamma / jnp.sqrt(running_var + eps)
    bias2 = (beta - running_mean * scale).astype(jnp.float32).reshape(1, Cout)
    w = jnp.transpose(weight_oihw, (2, 3, 1, 0)) * scale[None, None, None, :]  # KH,KW,Cin,Cout
    w = w.astype(compute_dtype)

    # ---- layout glue: NCHW -> padded, flattened NHWC ----
    # TODO(synk): keep the surrounding model NHWC end-to-end to drop these transposes/pad.
    x = jnp.transpose(x_nchw, (0, 2, 3, 1))
    x = jnp.pad(x, ((0, 0), (pad, pad + (Hp_pad - Hp)),
                    (pad, pad + (Wp_pad - Wp)), (0, 0)))
    x = x.reshape(N, Lp, Cin).astype(compute_dtype)

    # ---- tiling: (batch, output-row blocks, output-channel blocks) ----
    th = block_rows if Ho % block_rows == 0 else Ho
    ct = Cout if Cout <= 128 else 128
    assert Cout % ct == 0
    grid = (N, Ho // th, Cout // ct)

    kernel = functools.partial(_conv_bn_relu_kernel, wp_pad=Wp_pad, slope=slope)

    out_nhwc = pl.pallas_call(
        kernel,
        out_shape=jax.ShapeDtypeStruct((N, Ho, Wo, Cout), x_nchw.dtype),
        grid=grid,
        in_specs=[
            # Whole flattened padded image of one batch element; the block index ignores
            # (r, c) so it stays VMEM-resident across the row / channel blocks.
            pl.BlockSpec((None, Lp, Cin), lambda n, r, c: (n, 0, 0)),
            pl.BlockSpec((KH, KW, Cin, ct), lambda n, r, c: (0, 0, 0, c)),
            pl.BlockSpec((1, ct), lambda n, r, c: (0, c)),
        ],
        out_specs=pl.BlockSpec((None, th, Wo, ct), lambda n, r, c: (n, r, 0, c)),
        compiler_params=pltpu.CompilerParams(
            dimension_semantics=("parallel", "parallel", "parallel"),
            vmem_limit_bytes=48 * 1024 * 1024),
    )(x, w, bias2)

    return jnp.transpose(out_nhwc, (0, 3, 1, 2))  # back to NCHW


def _reference(x_nchw, weight_oihw, gamma, beta, running_mean, running_var,
               *, pad=1, eps=1e-5, slope=0.01):
    """Pure-JAX reference for correctness checking."""
    y = jax.lax.conv_general_dilated(
        x_nchw, weight_oihw, window_strides=(1, 1),
        padding=((pad, pad), (pad, pad)),
        dimension_numbers=("NCHW", "OIHW", "NCHW"))
    scale = (gamma / jnp.sqrt(running_var + eps)).reshape(1, -1, 1, 1)
    bias = (beta - running_mean * gamma / jnp.sqrt(running_var + eps)).reshape(1, -1, 1, 1)
    y = y * scale + bias
    return jnp.where(y >= 0, y, slope * y)


if __name__ == "__main__":
    key = jax.random.PRNGKey(0)
    k_x, k_w, k_g, k_b, k_m, k_v = jax.random.split(key, 6)

    N, Cin, Cout, H, W, K = 2, 4, 8, 16, 16, 3

    x = jax.random.normal(k_x, (N, Cin, H, W), dtype=jnp.float32)
    weight = jax.random.normal(k_w, (Cout, Cin, K, K), dtype=jnp.float32) * 0.1
    gamma = jax.random.uniform(k_g, (Cout,), minval=0.5, maxval=1.5, dtype=jnp.float32)
    beta = jax.random.normal(k_b, (Cout,), dtype=jnp.float32) * 0.1
    running_mean = jax.random.normal(k_m, (Cout,), dtype=jnp.float32) * 0.1
    running_var = jax.random.uniform(k_v, (Cout,), minval=0.5, maxval=1.5, dtype=jnp.float32)

    ref = _reference(x, weight, gamma, beta, running_mean, running_var)

    # Exact-dtype path (matches the PyTorch module's f32 numerics).
    out_f32 = conv_bn_relu(x, weight, gamma, beta, running_mean, running_var,
                           compute_dtype=jnp.float32)
    out_f32 = jax.block_until_ready(out_f32)
    assert out_f32.shape == (N, Cout, H, W), out_f32.shape
    err_f32 = float(jnp.max(jnp.abs(out_f32 - ref)))
    assert jnp.allclose(out_f32, ref, atol=1e-4, rtol=1e-4), err_f32

    # Default bf16-MXU perf path (f32 accumulation) -> looser tolerance.
    out_bf16 = jax.block_until_ready(
        conv_bn_relu(x, weight, gamma, beta, running_mean, running_var))
    assert out_bf16.shape == (N, Cout, H, W), out_bf16.shape
    err_bf16 = float(jnp.max(jnp.abs(out_bf16 - ref)))
    assert jnp.allclose(out_bf16, ref, atol=5e-2, rtol=5e-2), err_bf16

    print("KERNEL_OK")
</pallas_src>

<mosaic_0001>
module attributes {stable_mosaic.version = 11 : i64} {
  func.func @_conv_bn_relu_kernel(%arg0: i32, %arg1: i32, %arg2: i32, %arg3: memref<1x456x4xf32, #tpu.memory_space<vmem>>, %arg4: memref<3x3x4x8xf32, #tpu.memory_space<vmem>>, %arg5: memref<1x8xf32, #tpu.memory_space<vmem>>, %arg6: memref<1x8x16x8xf32, #tpu.memory_space<vmem>>) attributes {dimension_semantics = [#tpu.dimension_semantics<parallel>, #tpu.dimension_semantics<parallel>, #tpu.dimension_semantics<parallel>], iteration_bounds = array<i64: 2, 2, 1>, scalar_prefetch = 0 : i64, scratch_operands = 0 : i64, tpu.core_type = #tpu.core_type<tc>, window_params = [{transform_indices = @transform_0, window_bounds = array<i64: 1, 456, 4>}, {transform_indices = @transform_1, window_bounds = array<i64: 3, 3, 4, 8>}, {transform_indices = @transform_2, window_bounds = array<i64: 1, 8>}, {transform_indices = @transform_3, window_bounds = array<i64: 1, 8, 16, 8>}]} {
    %c8_i32 = arith.constant 8 : i32
    %0 = arith.muli %arg1, %c8_i32 : i32
    %cst = arith.constant 0.000000e+00 : f32
    %1 = vector.broadcast %cst : f32 to vector<192x8xf32>
    %c0_i32 = arith.constant 0 : i32
    %2 = arith.addi %0, %c0_i32 : i32
    %c24_i32 = arith.constant 24 : i32
    %3 = arith.muli %2, %c24_i32 : i32
    %4 = tpu.assume_multiple %3, 8 : i32
    %c0_i32_0 = arith.constant 0 : i32
    %5 = arith.addi %4, %c0_i32_0 : i32
    %c0 = arith.constant 0 : index
    %6 = arith.index_cast %5 : i32 to index
    %c0_1 = arith.constant 0 : index
    %7 = vector.load %arg3[%c0, %6, %c0_1] : memref<1x456x4xf32, #tpu.memory_space<vmem>>, vector<1x192x4xf32>
    %8 = vector.shape_cast %7 : vector<1x192x4xf32> to vector<192x4xf32>
    %c0_2 = arith.constant 0 : index
    %c0_3 = arith.constant 0 : index
    %c0_4 = arith.constant 0 : index
    %c0_5 = arith.constant 0 : index
    %9 = vector.load %arg4[%c0_2, %c0_3, %c0_4, %c0_5] : memref<3x3x4x8xf32, #tpu.memory_space<vmem>>, vector<1x1x4x8xf32>
    %10 = vector.shape_cast %9 : vector<1x1x4x8xf32> to vector<4x8xf32>
    %cst_6 = arith.constant dense<0.000000e+00> : vector<192x8xf32>
    %11 = tpu.matmul %8, %10, %cst_6 {dimension_numbers = #tpu.dot_dimension_numbers<[1], [0], [0], [1], [0, 0, 1, 1], [], []>} : vector<192x4xf32>, vector<4x8xf32>, vector<192x8xf32> -> vector<192x8xf32>
    %12 = arith.addf %1, %11 : vector<192x8xf32>
    %c1_i32 = arith.constant 1 : i32
    %13 = arith.addi %4, %c1_i32 : i32
    %c0_7 = arith.constant 0 : index
    %14 = arith.index_cast %13 : i32 to index
    %c0_8 = arith.constant 0 : index
    %15 = vector.load %arg3[%c0_7, %14, %c0_8] : memref<1x456x4xf32, #tpu.memory_space<vmem>>, vector<1x192x4xf32>
    %16 = vector.shape_cast %15 : vector<1x192x4xf32> to vector<192x4xf32>
    %c0_9 = arith.constant 0 : index
    %c1 = arith.constant 1 : index
    %c0_10 = arith.constant 0 : index
    %c0_11 = arith.constant 0 : index
    %17 = vector.load %arg4[%c0_9, %c1, %c0_10, %c0_11] : memref<3x3x4x8xf32, #tpu.memory_space<vmem>>, vector<1x1x4x8xf32>
    %18 = vector.shape_cast %17 : vector<1x1x4x8xf32> to vector<4x8xf32>
    %cst_12 = arith.constant dense<0.000000e+00> : vector<192x8xf32>
    %19 = tpu.matmul %16, %18, %cst_12 {dimension_numbers = #tpu.dot_dimension_numbers<[1], [0], [0], [1], [0, 0, 1, 1], [], []>} : vector<192x4xf32>, vector<4x8xf32>, vector<192x8xf32> -> vector<192x8xf32>
    %20 = arith.addf %12, %19 : vector<192x8xf32>
    %c2_i32 = arith.constant 2 : i32
    %21 = arith.addi %4, %c2_i32 : i32
    %c0_13 = arith.constant 0 : index
    %22 = arith.index_cast %21 : i32 to index
    %c0_14 = arith.constant 0 : index
    %23 = vector.load %arg3[%c0_13, %22, %c0_14] : memref<1x456x4xf32, #tpu.memory_space<vmem>>, vector<1x192x4xf32>
    %24 = vector.shape_cast %23 : vector<1x192x4xf32> to vector<192x4xf32>
    %c0_15 = arith.constant 0 : index
    %c2 = arith.constant 2 : index
    %c0_16 = arith.constant 0 : index
    %c0_17 = arith.constant 0 : index
    %25 = vector.load %arg4[%c0_15, %c2, %c0_16, %c0_17] : memref<3x3x4x8xf32, #tpu.memory_space<vmem>>, vector<1x1x4x8xf32>
    %26 = vector.shape_cast %25 : vector<1x1x4x8xf32> to vector<4x8xf32>
    %cst_18 = arith.constant dense<0.000000e+00> : vector<192x8xf32>
    %27 = tpu.matmul %24, %26, %cst_18 {dimension_numbers = #tpu.dot_dimension_numbers<[1], [0], [0], [1], [0, 0, 1, 1], [], []>} : vector<192x4xf32>, vector<4x8xf32>, vector<192x8xf32> -> vector<192x8xf32>
    %28 = arith.addf %20, %27 : vector<192x8xf32>
    %c1_i32_19 = arith.constant 1 : i32
    %29 = arith.addi %0, %c1_i32_19 : i32
    %c24_i32_20 = arith.constant 24 : i32
    %30 = arith.muli %29, %c24_i32_20 : i32
    %31 = tpu.assume_multiple %30, 8 : i32
    %c0_i32_21 = arith.constant 0 : i32
    %32 = arith.addi %31, %c0_i32_21 : i32
    %c0_22 = arith.constant 0 : index
    %33 = arith.index_cast %32 : i32 to index
    %c0_23 = arith.constant 0 : index
    %34 = vector.load %arg3[%c0_22, %33, %c0_23] : memref<1x456x4xf32, #tpu.memory_space<vmem>>, vector<1x192x4xf32>
    %35 = vector.shape_cast %34 : vector<1x192x4xf32> to vector<192x4xf32>
    %c1_24 = arith.constant 1 : index
    %c0_25 = arith.constant 0 : index
    %c0_26 = arith.constant 0 : index
    %c0_27 = arith.constant 0 : index
    %36 = vector.load %arg4[%c1_24, %c0_25, %c0_26, %c0_27] : memref<3x3x4x8xf32, #tpu.memory_space<vmem>>, vector<1x1x4x8xf32>
    %37 = vector.shape_cast %36 : vector<1x1x4x8xf32> to vector<4x8xf32>
    %cst_28 = arith.constant dense<0.000000e+00> : vector<192x8xf32>
    %38 = tpu.matmul %35, %37, %cst_28 {dimension_numbers = #tpu.dot_dimension_numbers<[1], [0], [0], [1], [0, 0, 1, 1], [], []>} : vector<192x4xf32>, vector<4x8xf32>, vector<192x8xf32> -> vector<192x8xf32>
    %39 = arith.addf %28, %38 : vector<192x8xf32>
    %c1_i32_29 = arith.constant 1 : i32
    %40 = arith.addi %31, %c1_i32_29 : i32
    %c0_30 = arith.constant 0 : index
    %41 = arith.index_cast %40 : i32 to index
    %c0_31 = arith.constant 0 : index
    %42 = vector.load %arg3[%c0_30, %41, %c0_31] : memref<1x456x4xf32, #tpu.memory_space<vmem>>, vector<1x192x4xf32>
    %43 = vector.shape_cast %42 : vector<1x192x4xf32> to vector<192x4xf32>
    %c1_32 = arith.constant 1 : index
    %c1_33 = arith.constant 1 : index
    %c0_34 = arith.constant 0 : index
    %c0_35 = arith.constant 0 : index
    %44 = vector.load %arg4[%c1_32, %c1_33, %c0_34, %c0_35] : memref<3x3x4x8xf32, #tpu.memory_space<vmem>>, vector<1x1x4x8xf32>
    %45 = vector.shape_cast %44 : vector<1x1x4x8xf32> to vector<4x8xf32>
    %cst_36 = arith.constant dense<0.000000e+00> : vector<192x8xf32>
    %46 = tpu.matmul %43, %45, %cst_36 {dimension_numbers = #tpu.dot_dimension_numbers<[1], [0], [0], [1], [0, 0, 1, 1], [], []>} : vector<192x4xf32>, vector<4x8xf32>, vector<192x8xf32> -> vector<192x8xf32>
    %47 = arith.addf %39, %46 : vector<192x8xf32>
    %c2_i32_37 = arith.constant 2 : i32
    %48 = arith.addi %31, %c2_i32_37 : i32
    %c0_38 = arith.constant 0 : index
    %49 = arith.index_cast %48 : i32 to index
    %c0_39 = arith.constant 0 : index
    %50 = vector.load %arg3[%c0_38, %49, %c0_39] : memref<1x456x4xf32, #tpu.memory_space<vmem>>, vector<1x192x4xf32>
    %51 = vector.shape_cast %50 : vector<1x192x4xf32> to vector<192x4xf32>
    %c1_40 = arith.constant 1 : index
    %c2_41 = arith.constant 2 : index
    %c0_42 = arith.constant 0 : index
    %c0_43 = arith.constant 0 : index
    %52 = vector.load %arg4[%c1_40, %c2_41, %c0_42, %c0_43] : memref<3x3x4x8xf32, #tpu.memory_space<vmem>>, vector<1x1x4x8xf32>
    %53 = vector.shape_cast %52 : vector<1x1x4x8xf32> to vector<4x8xf32>
    %cst_44 = arith.constant dense<0.000000e+00> : vector<192x8xf32>
    %54 = tpu.matmul %51, %53, %cst_44 {dimension_numbers = #tpu.dot_dimension_numbers<[1], [0], [0], [1], [0, 0, 1, 1], [], []>} : vector<192x4xf32>, vector<4x8xf32>, vector<192x8xf32> -> vector<192x8xf32>
    %55 = arith.addf %47, %54 : vector<192x8xf32>
    %c2_i32_45 = arith.constant 2 : i32
    %56 = arith.addi %0, %c2_i32_45 : i32
    %c24_i32_46 = arith.constant 24 : i32
    %57 = arith.muli %56, %c24_i32_46 : i32
    %58 = tpu.assume_multiple %57, 8 : i32
    %c0_i32_47 = arith.constant 0 : i32
    %59 = arith.addi %58, %c0_i32_47 : i32
    %c0_48 = arith.constant 0 : index
    %60 = arith.index_cast %59 : i32 to index
    %c0_49 = arith.constant 0 : index
    %61 = vector.load %arg3[%c0_48, %60, %c0_49] : memref<1x456x4xf32, #tpu.memory_space<vmem>>, vector<1x192x4xf32>
    %62 = vector.shape_cast %61 : vector<1x192x4xf32> to vector<192x4xf32>
    %c2_50 = arith.constant 2 : index
    %c0_51 = arith.constant 0 : index
    %c0_52 = arith.constant 0 : index
    %c0_53 = arith.constant 0 : index
    %63 = vector.load %arg4[%c2_50, %c0_51, %c0_52, %c0_53] : memref<3x3x4x8xf32, #tpu.memory_space<vmem>>, vector<1x1x4x8xf32>
    %64 = vector.shape_cast %63 : vector<1x1x4x8xf32> to vector<4x8xf32>
    %cst_54 = arith.constant dense<0.000000e+00> : vector<192x8xf32>
    %65 = tpu.matmul %62, %64, %cst_54 {dimension_numbers = #tpu.dot_dimension_numbers<[1], [0], [0], [1], [0, 0, 1, 1], [], []>} : vector<192x4xf32>, vector<4x8xf32>, vector<192x8xf32> -> vector<192x8xf32>
    %66 = arith.addf %55, %65 : vector<192x8xf32>
    %c1_i32_55 = arith.constant 1 : i32
    %67 = arith.addi %58, %c1_i32_55 : i32
    %c0_56 = arith.constant 0 : index
    %68 = arith.index_cast %67 : i32 to index
    %c0_57 = arith.constant 0 : index
    %69 = vector.load %arg3[%c0_56, %68, %c0_57] : memref<1x456x4xf32, #tpu.memory_space<vmem>>, vector<1x192x4xf32>
    %70 = vector.shape_cast %69 : vector<1x192x4xf32> to vector<192x4xf32>
    %c2_58 = arith.constant 2 : index
    %c1_59 = arith.constant 1 : index
    %c0_60 = arith.constant 0 : index
    %c0_61 = arith.constant 0 : index
    %71 = vector.load %arg4[%c2_58, %c1_59, %c0_60, %c0_61] : memref<3x3x4x8xf32, #tpu.memory_space<vmem>>, vector<1x1x4x8xf32>
    %72 = vector.shape_cast %71 : vector<1x1x4x8xf32> to vector<4x8xf32>
    %cst_62 = arith.constant dense<0.000000e+00> : vector<192x8xf32>
    %73 = tpu.matmul %70, %72, %cst_62 {dimension_numbers = #tpu.dot_dimension_numbers<[1], [0], [0], [1], [0, 0, 1, 1], [], []>} : vector<192x4xf32>, vector<4x8xf32>, vector<192x8xf32> -> vector<192x8xf32>
    %74 = arith.addf %66, %73 : vector<192x8xf32>
    %c2_i32_63 = arith.constant 2 : i32
    %75 = arith.addi %58, %c2_i32_63 : i32
    %c0_64 = arith.constant 0 : index
    %76 = arith.index_cast %75 : i32 to index
    %c0_65 = arith.constant 0 : index
    %77 = vector.load %arg3[%c0_64, %76, %c0_65] : memref<1x456x4xf32, #tpu.memory_space<vmem>>, vector<1x192x4xf32>
    %78 = vector.shape_cast %77 : vector<1x192x4xf32> to vector<192x4xf32>
    %c2_66 = arith.constant 2 : index
    %c2_67 = arith.constant 2 : index
    %c0_68 = arith.constant 0 : index
    %c0_69 = arith.constant 0 : index
    %79 = vector.load %arg4[%c2_66, %c2_67, %c0_68, %c0_69] : memref<3x3x4x8xf32, #tpu.memory_space<vmem>>, vector<1x1x4x8xf32>
    %80 = vector.shape_cast %79 : vector<1x1x4x8xf32> to vector<4x8xf32>
    %cst_70 = arith.constant dense<0.000000e+00> : vector<192x8xf32>
    %81 = tpu.matmul %78, %80, %cst_70 {dimension_numbers = #tpu.dot_dimension_numbers<[1], [0], [0], [1], [0, 0, 1, 1], [], []>} : vector<192x4xf32>, vector<4x8xf32>, vector<192x8xf32> -> vector<192x8xf32>
    %82 = arith.addf %74, %81 : vector<192x8xf32>
    %83 = vector.shape_cast %82 : vector<192x8xf32> to vector<8x24x8xf32>
    %84 = vector.extract_strided_slice %83 {offsets = [0, 0, 0], sizes = [8, 16, 8], strides = [1, 1, 1]} : vector<8x24x8xf32> to vector<8x16x8xf32>
    %c0_71 = arith.constant 0 : index
    %c0_72 = arith.constant 0 : index
    %85 = vector.load %arg5[%c0_71, %c0_72] : memref<1x8xf32, #tpu.memory_space<vmem>>, vector<1x8xf32>
    %86 = vector.shape_cast %85 : vector<1x8xf32> to vector<8xf32>
    %87 = vector.shape_cast %86 : vector<8xf32> to vector<1x1x8xf32>
    %88 = vector.broadcast %87 : vector<1x1x8xf32> to vector<8x16x8xf32>
    %89 = arith.addf %84, %88 : vector<8x16x8xf32>
    %cst_73 = arith.constant 0.000000e+00 : f32
    %90 = vector.broadcast %cst_73 : f32 to vector<8x16x8xf32>
    %91 = arith.cmpf oge, %89, %90 : vector<8x16x8xf32>
    %cst_74 = arith.constant 0.00999999977 : f32
    %92 = vector.broadcast %cst_74 : f32 to vector<8x16x8xf32>
    %93 = arith.mulf %92, %89 : vector<8x16x8xf32>
    %94 = arith.select %91, %89, %93 : vector<8x16x8xi1>, vector<8x16x8xf32>
    %c0_75 = arith.constant 0 : index
    %c0_76 = arith.constant 0 : index
    %c0_77 = arith.constant 0 : index
    %c0_78 = arith.constant 0 : index
    %95 = vector.load %arg6[%c0_75, %c0_76, %c0_77, %c0_78] : memref<1x8x16x8xf32, #tpu.memory_space<vmem>>, vector<1x8x16x8xf32>
    %96 = vector.shape_cast %95 : vector<1x8x16x8xf32> to vector<8x16x8xf32>
    %97 = vector.shape_cast %94 : vector<8x16x8xf32> to vector<1x8x16x8xf32>
    tpu.vector_store %arg6[%c0_75, %c0_76, %c0_77, %c0_78], %97 {strides = array<i32>} : memref<1x8x16x8xf32, #tpu.memory_space<vmem>>, vector<1x8x16x8xf32>,
    return
  }
  func.func @transform_0(%arg0: i32, %arg1: i32, %arg2: i32) -> (i32, i32, i32) {
    %c0_i32 = arith.constant 0 : i32
    %c0_i32_0 = arith.constant 0 : i32
    %c0_i32_1 = arith.constant 0 : i32
    return %arg0, %c0_i32, %c0_i32_0 : i32, i32, i32
  }
  func.func @transform_1(%arg0: i32, %arg1: i32, %arg2: i32) -> (i32, i32, i32, i32) {
    %c0_i32 = arith.constant 0 : i32
    %c0_i32_0 = arith.constant 0 : i32
    %c0_i32_1 = arith.constant 0 : i32
    %c0_i32_2 = arith.constant 0 : i32
    return %c0_i32, %c0_i32_0, %c0_i32_1, %arg2 : i32, i32, i32, i32
  }
  func.func @transform_2(%arg0: i32, %arg1: i32, %arg2: i32) -> (i32, i32) {
    %c0_i32 = arith.constant 0 : i32
    %c0_i32_0 = arith.constant 0 : i32
    return %c0_i32, %arg2 : i32, i32
  }
  func.func @transform_3(%arg0: i32, %arg1: i32, %arg2: i32) -> (i32, i32, i32, i32) {
    %c0_i32 = arith.constant 0 : i32
    %c0_i32_0 = arith.constant 0 : i32
    return %arg0, %arg1, %c0_i32, %arg2 : i32, i32, i32, i32
  }
}

</mosaic_0001>

<bundles_post_ra>
// kernel: tpu_custom_call.1
= control target key start
LH: loop header
LB: loop body
LE: loop exit
PB: predicated region body
PF: predicated region fallthrough
CT: control target
= control target key end

     0   :  { %s4314_s12 = smov 0   ;;  %s4316_s13 = smov 0   ;;  %s5236_s0 = inlined_call_operand.vmem [shape: f32[2,456,4], index: 0, kind: input, shape index: {}]   ;;  %s5237_s1 = inlined_call_operand.vmem [shape: f32[3,3,4,8], index: 1, kind: input, shape index: {}]   ;;  %s5238_s2 = inlined_call_operand.vmem [shape: f32[1,8], index: 2, kind: input, shape index: {}]   ;;  %s5239_s3 = inlined_call_operand.vmem [shape: f32[2,16,16,8], index: 3, kind: output, shape index: {}]  }
   0x1   :  { %s4318_s14 = smov 0   ;;  %s4320_s15 = smov 0  }
   0x2   :  { %s4322_s16 = smov 0  }
   0x3 LB: > { %s28_s17 = sadd.s32 1, %s4284_s14  ;;  %s32_s18 = sadd.s32 1, %s4288_s15  ;;  %s4292_s16 = sphi %s4322_s16, %s13_s16   ;;  %s4288_s15 = sphi %s4320_s15, %s5258_s15   ;;  %s4284_s14 = sphi %s4318_s14, %s5257_s14   ;;  %s4280_s13 = sphi %s4316_s13, %s5256_s13   ;;  %s4276_s12 = sphi %s4314_s12, %s5255_s12  }
   0x4   : > { %p30_p0 = scmp.ge.s32.totalorder %s28_s17, 2  ;;  %p3134_p1 = scmp.ge.s32.totalorder %s4292_s16, 1 }
   0x5   : > { %p177_p2 = scmp.lt.s32.totalorder %s4292_s16, 5 }
   0x6   : > { %s5260_s17 = smov (%p30_p0, %s28_s17), 0  ;;  %s5262_s18 = smov (!%p30_p0, %s32_s18), %s4288_s15 }
   0x7   : > { %p178_p3 = pnand %p3134_p1, %p177_p2  ;;  %p34_p4 = scmp.ge.s32.totalorder %s5262_s18, 2 }
   0x9   : > { %s5264_s18 = smov (%p34_p4, %s5262_s18), 0  ;;  %181 = sbr.rel (%p178_p3) target bundleno = 466 (0x1d2), region = 32 }
  0x10   : > { %v3164_v0 = vld [vmem:[%s5237_s1 + $0x4] sm:$0xf]  ;;  %vm371_vm0 = vcmask 1043456   ;;  %v4352_v1 = vld [vmem:[%s5237_s1 + $0x10] sm:$0xf]  ;;  %p216_p5 = scmp.lt.s32.totalorder %s4280_s13, 1 }
  0x11   : > { %3805 = vmatprep.subr.msk.mxu1 %vm371_vm0, %v3164_v0  ;;  %3957 = vmatprep.subr.msk.mxu0 %vm371_vm0, %v4352_v1  ;;  %v269_v2 = vld [vmem:[%s5237_s1] sm:$0xf]  ;;  %v3395_v3 = vld [vmem:[%s5237_s1 + $0x14] sm:$0xf]  ;;  %s243_s27 = smul.u32 192, %s4276_s12  ;;  %vm298_vm1 = vcmask 31744  }
  0x12   : > { %3806 = vmatpush3.msk.msra.mxu1 %vm371_vm0, %v3164_v0  ;;  %s5266_s13 = smov (!%p216_p5, %s4280_s13), 1  ;;  %3958 = vmatpush3.msk.msra.mxu0 %vm371_vm0, %v4352_v1  ;;  %v3447_v10 = vld [vmem:[%s5237_s1 + $0x18] sm:$0xf]  ;;  %v4393_v11 = vld [vmem:[%s5237_s1 + $0x8] sm:$0xf]  ;;  %s3136_s23 = sshll.u32 %s4276_s12, 3 }
  0x13   : > { %3843 = vmatprep.subr.msk.mxu1 %vm371_vm0, %v269_v2  ;;  %3995 = vmatprep.subr.msk.mxu0 %vm371_vm0, %v3395_v3  ;;  %s4213_s28 = smul.u32 456, %s5266_s13  ;;  %v4482_v24 = vld [vmem:[%s5237_s1 + $0x1c] sm:$0xf]  ;;  %v4599_v49 = vld [vmem:[%s5237_s1 + $0xc] sm:$0xf]  ;;  %p231_p6 = scmp.lt.s32.totalorder %s3136_s23, 15 }
  0x14   : > { %s3138_s24 = sshll.u32 %s5266_s13, 5  ;;  %vm2949_vm2 = vcmask 64512  }
  0x15   : > { %s220_s4 = scalar_lea.vmem %s5236_s0, %s4213_s28  ;;  %s5268_s23 = smov (!%p231_p6, %s3136_s23), 15 }
  0x16   : > { %s4375_s5 = scalar_lea.vmem %s220_s4, %s243_s27  ;;  %s3137_s12 = sshll.u32 %s5268_s23, 1 }
  0x17   : > { %v3140_v4 = vld [vmem:[%s4375_s5 + $0x1] sm:$0xff]  ;;  %v3319_v5 = vld [vmem:[%s4375_s5 + $0x19] sm:$0xff]  ;;  %v3141_v6 = vld [vmem:[%s4375_s5 + $0x9] sm:$0xff]  ;;  %s238_s25 = sadd.s32 %s3138_s24, %s3137_s12 }
  0x18   : > { %3807 = vmatprep.mubr.msk.f32.mxu1 %vm298_vm1, %v3140_v4  ;;  %3959 = vmatprep.mubr.msk.f32.mxu0 %vm298_vm1, %v3319_v5  ;;  %v3320_v7 = vld [vmem:[%s4375_s5 + $0x21] sm:$0xff]  ;;  %v3142_v8 = vld [vmem:[%s4375_s5 + $0x11] sm:$0xff]  ;;  %v3321_v9 = vld [vmem:[%s4375_s5 + $0x29] sm:$0xff]  ;;  %s3139_s13 = sshll.u32 %s238_s25, 3 }
  0x19   : > { %3808 = vmatmul.mubr.msk.f32.vlgmr.msra.gmra.mrb[0].mxu1 %vm298_vm1, %v3141_v6  ;;  %3960 = vmatmul.mubr.msk.f32.vlgmr.msra.gmra.mrb[0].mxu0 %vm298_vm1, %v3320_v7  ;;  %v4398_v12 = vld [vmem:[%s4375_s5 + $0x31] sm:$0xff]  ;;  %v4402_v13 = vld [vmem:[%s4375_s5 + $0x39] sm:$0xff]  ;;  %v4415_v14 = vld [vmem:[%s4375_s5 + $0x41] sm:$0xff]  ;;  %s5142_s30 = scalar_lea.vmem %s5239_s3, %s3139_s13 }
  0x1a   : > { %3844 = vmatpush3.msk.msra.mxu1 %vm371_vm0, %v269_v2  ;;  %3810 = vmatprep.mubr.msk.f32.mxu1 %vm298_vm1, %v3142_v8  ;;  %v4418_v15 = vld [vmem:[%s4375_s5 + $0x49] sm:$0xff]  ;;  %v4428_v16 = vld [vmem:[%s4375_s5 + $0x51] sm:$0xff]  ;;  %v4431_v17 = vld [vmem:[%s4375_s5 + $0x59] sm:$0xff] }
  0x1b   : > { %3962 = vmatprep.mubr.msk.f32.mxu0 %vm298_vm1, %v3321_v9  ;;  %3996 = vmatpush3.msk.msra.mxu0 %vm371_vm0, %v3395_v3  ;;  %v4442_v18 = vld [vmem:[%s4375_s5 + $0x61] sm:$0xff]  ;;  %v4445_v19 = vld [vmem:[%s4375_s5 + $0x69] sm:$0xff]  ;;  %v4456_v20 = vld [vmem:[%s4375_s5 + $0x71] sm:$0xff] }
  0x1c   : > { %4033 = vmatprep.subr.msk.mxu0 %vm371_vm0, %v3447_v10  ;;  %3881 = vmatprep.subr.msk.mxu1 %vm371_vm0, %v4393_v11  ;;  %v4459_v21 = vld [vmem:[%s4375_s5 + $0x1a] sm:$0xff]  ;;  %v4470_v22 = vld [vmem:[%s4375_s5 + $0x22] sm:$0xff]  ;;  %v4473_v23 = vld [vmem:[%s4375_s5 + $0x2a] sm:$0xff] }
  0x1d   : > { %3811 = vmatmul.mubr.msk.f32.gmra.mrb[2].mxu1 %vm298_vm1, %v3319_v5  ;;  %3963 = vmatmul.mubr.msk.f32.gmra.mrb[2].mxu0 %vm298_vm1, %v4398_v12  ;;  %v4489_v25 = vld [vmem:[%s4375_s5 + $0x79] sm:$0xff]  ;;  %v4495_v27 = vld [vmem:[%s4375_s5 + $0x81] sm:$0xff]  ;;  %v4512_v29 = vld [vmem:[%s4375_s5 + $0x89] sm:$0xff] }
  0x1e   : > { %3813 = vmatprep.mubr.msk.f32.mxu1 %vm298_vm1, %v3320_v7  ;;  %3965 = vmatprep.mubr.msk.f32.mxu0 %vm298_vm1, %v4402_v13  ;;  %v4492_v26 = vld [vmem:[%s4375_s5 + $0x32] sm:$0xff]  ;;  %v4498_v28 = vld [vmem:[%s4375_s5 + $0x3a] sm:$0xff]  ;;  %v4515_v30 = vld [vmem:[%s4375_s5 + $0x42] sm:$0xff] }
  0x1f   : > { %v4518_v31 = vld [vmem:[%s4375_s5 + $0x91] sm:$0xff]  ;;  %v4532_v33 = vld [vmem:[%s4375_s5 + $0x99] sm:$0xff]  ;;  %v4538_v35 = vld [vmem:[%s4375_s5 + $0xa1] sm:$0xff] }
  0x20   : > { %v4521_v32 = vld [vmem:[%s4375_s5 + $0x4a] sm:$0xff]  ;;  %v4535_v34 = vld [vmem:[%s4375_s5 + $0x52] sm:$0xff]  ;;  %v4541_v36 = vld [vmem:[%s4375_s5 + $0x5a] sm:$0xff] }
  0x21   : > { %3814 = vmatmul.mubr.msk.f32.gmra.mrb[4].mxu1 %vm298_vm1, %v3321_v9  ;;  %3966 = vmatmul.mubr.msk.f32.gmra.mrb[4].mxu0 %vm298_vm1, %v4415_v14  ;;  %v4552_v37 = vld [vmem:[%s4375_s5 + $0xa9] sm:$0xff]  ;;  %v4558_v39 = vld [vmem:[%s4375_s5 + $0xb1] sm:$0xff]  ;;  %v4572_v41 = vld [vmem:[%s4375_s5 + $0xb9] sm:$0xff] }
  0x22   : > { %3816 = vmatprep.mubr.msk.f32.mxu1 %vm298_vm1, %v4398_v12  ;;  %3968 = vmatprep.mubr.msk.f32.mxu0 %vm298_vm1, %v4418_v15  ;;  %v4555_v38 = vld [vmem:[%s4375_s5 + $0x62] sm:$0xff]  ;;  %v4561_v40 = vld [vmem:[%s4375_s5 + $0x6a] sm:$0xff]  ;;  %v4575_v42 = vld [vmem:[%s4375_s5 + $0x72] sm:$0xff] }
  0x23   : > { %v245_v43 = vld [vmem:[%s4375_s5] sm:$0xff]  ;;  %v246_v45 = vld [vmem:[%s4375_s5 + $0x8] sm:$0xff]  ;;  %v247_v47 = vld [vmem:[%s4375_s5 + $0x10] sm:$0xff] }
  0x24   : > { %v4579_v44 = vld [vmem:[%s4375_s5 + $0x7a] sm:$0xff]  ;;  %v4590_v46 = vld [vmem:[%s4375_s5 + $0x82] sm:$0xff]  ;;  %v4594_v48 = vld [vmem:[%s4375_s5 + $0x8a] sm:$0xff] }
  0x25   : > { %3817 = vmatmul.mubr.msk.f32.gmra.mrb[6].mxu1 %vm298_vm1, %v4402_v13  ;;  %3969 = vmatmul.mubr.msk.f32.gmra.mrb[6].mxu0 %vm298_vm1, %v4428_v16  ;;  %v4608_v50 = vld [vmem:[%s4375_s5 + $0x18] sm:$0xff]  ;;  %v4616_v52 = vld [vmem:[%s4375_s5 + $0x20] sm:$0xff]  ;;  %v4632_v54 = vld [vmem:[%s4375_s5 + $0x28] sm:$0xff] }
  0x26   : > { %3819 = vmatprep.mubr.msk.f32.mxu1 %vm298_vm1, %v4415_v14  ;;  %3971 = vmatprep.mubr.msk.f32.mxu0 %vm298_vm1, %v4431_v17  ;;  %v4611_v51 = vld [vmem:[%s4375_s5 + $0x92] sm:$0xff]  ;;  %v4619_v53 = vld [vmem:[%s4375_s5 + $0x9a] sm:$0xff]  ;;  %v4635_v55 = vld [vmem:[%s4375_s5 + $0xa2] sm:$0xff] }
  0x27   : > { %v4638_v56 = vld [vmem:[%s4375_s5 + $0x30] sm:$0xff]  ;;  %v4652_v58 = vld [vmem:[%s4375_s5 + $0x38] sm:$0xff]  ;;  %v4658_v60 = vld [vmem:[%s4375_s5 + $0x40] sm:$0xff] }
  0x28   : > { %v4641_v57 = vld [vmem:[%s4375_s5 + $0xaa] sm:$0xff]  ;;  %v4655_v59 = vld [vmem:[%s4375_s5 + $0xb2] sm:$0xff]  ;;  %v4661_v61 = vld [vmem:[%s4375_s5 + $0xba] sm:$0xff] }
  0x29   : > { %3820 = vmatmul.mubr.msk.f32.gmra.mrb[8].mxu1 %vm298_vm1, %v4418_v15  ;;  %3972 = vmatmul.mubr.msk.f32.gmra.mrb[8].mxu0 %vm298_vm1, %v4442_v18  ;;  %v4672_v62 = vld [vmem:[%s4375_s5 + $0x48] sm:$0xff]  ;;  %v4678_v0 = vld [vmem:[%s4375_s5 + $0x50] sm:$0xff]  ;;  %v4692_v3 = vld [vmem:[%s4375_s5 + $0x58] sm:$0xff] }
  0x2a   : > { %3822 = vmatprep.mubr.msk.f32.mxu1 %vm298_vm1, %v4428_v16  ;;  %3974 = vmatprep.mubr.msk.f32.mxu0 %vm298_vm1, %v4445_v19  ;;  %v4675_v63 = vld [vmem:[%s4375_s5 + $0xc2] sm:$0xff]  ;;  %v4681_v2 = vld [vmem:[%s4375_s5 + $0xca] sm:$0xff]  ;;  %v4695_v4 = vld [vmem:[%s4375_s5 + $0xd2] sm:$0xff] }
  0x2b   : > { %5245 = vst [vmem:[#allocation2_spill] sm:$0xff] %v4675_v63  ;;  %5246 = vst [vmem:[#allocation3_spill] sm:$0xff] %v4681_v2  ;;  %v4698_v5 = vld [vmem:[%s4375_s5 + $0x60] sm:$0xff]  ;;  %v4709_v6 = vld [vmem:[%s4375_s5 + $0x68] sm:$0xff] }
  0x2c   : > { %5247 = vst [vmem:[#allocation4_spill] sm:$0xff] %v4695_v4  ;;  %v4712_v7 = vld [vmem:[%s4375_s5 + $0x70] sm:$0xff]  ;;  %v4721_v8 = vld [vmem:[%s5237_s1 + $0x20] sm:$0xf]  ;;  %v4728_v9 = vld [vmem:[%s4375_s5 + $0x78] sm:$0xff] }
  0x2d   : > { %3823 = vmatmul.mubr.msk.f32.gmra.mrb[10].mxu1 %vm298_vm1, %v4431_v17  ;;  %3975 = vmatmul.mubr.msk.f32.gmra.mrb[10].mxu0 %vm298_vm1, %v4456_v20  ;;  %5248 = vst [vmem:[#allocation5_spill] sm:$0xff] %v4712_v7  ;;  %5249 = vst [vmem:[#allocation6_spill] sm:$0xff] %v4728_v9 }
  0x2e   : > { %3825 = vmatprep.mubr.msk.f32.mxu1 %vm298_vm1, %v4442_v18  ;;  %3997 = vmatprep.mubr.msk.f32.mxu0 %vm298_vm1, %v4459_v21 }
  0x31   : > { %3826 = vmatmul.mubr.msk.f32.gmra.mrb[12].mxu1 %vm298_vm1, %v4445_v19  ;;  %3998 = vmatmul.mubr.msk.f32.vlgmr.msra.gmra.mrb[0].mxu0 %vm298_vm1, %v4470_v22 }
  0x32   : > { %3828 = vmatprep.mubr.msk.f32.mxu1 %vm298_vm1, %v4456_v20  ;;  %4000 = vmatprep.mubr.msk.f32.mxu0 %vm298_vm1, %v4473_v23 }
  0x33   : > { %4034 = vmatpush3.msk.msra.mxu0 %vm371_vm0, %v3447_v10  ;;  %v4731_v10 = vld [vmem:[%s4375_s5 + $0x80] sm:$0xff] }
  0x34   : > { %4071 = vmatprep.subr.msk.mxu0 %vm371_vm0, %v4482_v24 }
  0x35   : > { %3829 = vmatmul.mubr.msk.f32.gmra.mrb[14].mxu1 %vm298_vm1, %v4489_v25  ;;  %4001 = vmatmul.mubr.msk.f32.gmra.mrb[12].mxu0 %vm298_vm1, %v4492_v26 }
  0x36   : > { %3831 = vmatprep.mubr.msk.f32.mxu1 %vm298_vm1, %v4495_v27  ;;  %4003 = vmatprep.mubr.msk.f32.mxu0 %vm298_vm1, %v4498_v28 }
  0x39   : > { %3832 = vmatmul.mubr.msk.f32.gmra.mrb[16].mxu1 %vm298_vm1, %v4512_v29  ;;  %4004 = vmatmul.mubr.msk.f32.gmra.mrb[14].mxu0 %vm298_vm1, %v4515_v30 }
  0x3a   : > { %3834 = vmatprep.mubr.msk.f32.mxu1 %vm298_vm1, %v4518_v31  ;;  %4006 = vmatprep.mubr.msk.f32.mxu0 %vm298_vm1, %v4521_v32 }
  0x3d   : > { %3835 = vmatmul.mubr.msk.f32.gmra.mrb[18].mxu1 %vm298_vm1, %v4532_v33  ;;  %4007 = vmatmul.mubr.msk.f32.gmra.mrb[6].mxu0 %vm298_vm1, %v4535_v34 }
  0x3e   : > { %3837 = vmatprep.mubr.msk.f32.mxu1 %vm298_vm1, %v4538_v35  ;;  %4009 = vmatprep.mubr.msk.f32.mxu0 %vm298_vm1, %v4541_v36 }
  0x41   : > { %3838 = vmatmul.mubr.msk.f32.gmra.mrb[20].mxu1 %vm298_vm1, %v4552_v37  ;;  %4010 = vmatmul.mubr.msk.f32.gmra.mrb[16].mxu0 %vm298_vm1, %v4555_v38 }
  0x42   : > { %3840 = vmatprep.mubr.msk.f32.mxu1 %vm298_vm1, %v4558_v39  ;;  %4012 = vmatprep.mubr.msk.f32.mxu0 %vm298_vm1, %v4561_v40 }
  0x45   : > { %3841 = vmatmul.mubr.msk.f32.gmra.mrb[22].mxu1 %vm298_vm1, %v4572_v41  ;;  %4013 = vmatmul.mubr.msk.f32.gmra.mrb[18].mxu0 %vm298_vm1, %v4575_v42 }
  0x46   : > { %3845 = vmatprep.mubr.msk.f32.mxu1 %vm298_vm1, %v245_v43  ;;  %4015 = vmatprep.mubr.msk.f32.mxu0 %vm298_vm1, %v4579_v44  ;;  %v4760_v43 = vld [vmem:[%s4375_s5 + $0x98] sm:$0xff] }
  0x49   : > { %3846 = vmatmul.mubr.msk.f32.vlgmr.msra.gmra.mrb[0].mxu1 %vm298_vm1, %v246_v45  ;;  %4016 = vmatmul.mubr.msk.f32.gmra.mrb[20].mxu0 %vm298_vm1, %v4590_v46  ;;  %v4763_v45 = vld [vmem:[%s4375_s5 + $0xa0] sm:$0xff] }
  0x4a   : > { %3882 = vmatpush3.msk.msra.mxu1 %vm371_vm0, %v4393_v11  ;;  %3848 = vmatprep.mubr.msk.f32.mxu1 %vm298_vm1, %v247_v47  ;;  %v4746_v11 = vld [vmem:[%s4375_s5 + $0x88] sm:$0xff] }
  0x4b   : > { %4018 = vmatprep.mubr.msk.f32.mxu0 %vm298_vm1, %v4594_v48  ;;  %3919 = vmatprep.subr.msk.mxu1 %vm371_vm0, %v4599_v49  ;;  %v4774_v47 = vld [vmem:[%s4375_s5 + $0xa8] sm:$0xff] }
  0x4d   : > { %3849 = vmatmul.mubr.msk.f32.gmra.mrb[24].mxu1 %vm298_vm1, %v4608_v50  ;;  %4019 = vmatmul.mubr.msk.f32.gmra.mrb[22].mxu0 %vm298_vm1, %v4611_v51 }
  0x4e   : > { %3851 = vmatprep.mubr.msk.f32.mxu1 %vm298_vm1, %v4616_v52  ;;  %4021 = vmatprep.mubr.msk.f32.mxu0 %vm298_vm1, %v4619_v53 }
  0x51   : > { %3852 = vmatmul.mubr.msk.f32.gmra.mrb[26].mxu1 %vm298_vm1, %v4632_v54  ;;  %4022 = vmatmul.mubr.msk.f32.gmra.mrb[24].mxu0 %vm298_vm1, %v4635_v55 }
  0x52   : > { %3854 = vmatprep.mubr.msk.f32.mxu1 %vm298_vm1, %v4638_v56  ;;  %4024 = vmatprep.mubr.msk.f32.mxu0 %vm298_vm1, %v4641_v57 }
  0x55   : > { %3855 = vmatmul.mubr.msk.f32.gmra.mrb[6].mxu1 %vm298_vm1, %v4652_v58  ;;  %4025 = vmatmul.mubr.msk.f32.gmra.mrb[26].mxu0 %vm298_vm1, %v4655_v59 }
  0x56   : > { %3857 = vmatprep.mubr.msk.f32.mxu1 %vm298_vm1, %v4658_v60  ;;  %4027 = vmatprep.mubr.msk.f32.mxu0 %vm298_vm1, %v4661_v61 }
  0x59   : > { %3858 = vmatmul.mubr.msk.f32.gmra.mrb[28].mxu1 %vm298_vm1, %v4672_v62  ;;  %4028 = vmatmul.mubr.msk.f32.gmra.mrb[28].mxu0 %vm298_vm1, %v4675_v63  ;;  %v3215_v63 = vld [vmem:[%s4375_s5 + $0x2] sm:$0xff] }
  0x5a   : > { %3860 = vmatprep.mubr.msk.f32.mxu1 %vm298_vm1, %v4678_v0  ;;  %4030 = vmatprep.mubr.msk.f32.mxu0 %vm298_vm1, %v4681_v2  ;;  %v4788_v2 = vld [vmem:[%s4375_s5 + $0xb8] sm:$0xff] }
  0x5d   : > { %3861 = vmatmul.mubr.msk.f32.gmra.mrb[30].mxu1 %vm298_vm1, %v4692_v3  ;;  %4031 = vmatmul.mubr.msk.f32.gmra.mrb[30].mxu0 %vm298_vm1, %v4695_v4  ;;  %v4777_v4 = vld [vmem:[%s4375_s5 + $0xb0] sm:$0xff] }
  0x5e   : > { %3863 = vmatprep.mubr.msk.f32.mxu1 %vm298_vm1, %v4698_v5  ;;  %4035 = vmatprep.mubr.msk.f32.mxu0 %vm298_vm1, %v4638_v56 }
  0x61   : > { %3864 = vmatmul.mubr.msk.f32.gmra.mrb[12].mxu1 %vm298_vm1, %v4709_v6  ;;  %4036 = vmatmul.mubr.msk.f32.vlgmr.msra.gmra.mrb[0].mxu0 %vm298_vm1, %v4652_v58 }
  0x62   : > { %3866 = vmatprep.mubr.msk.f32.mxu1 %vm298_vm1, %v4712_v7  ;;  %4038 = vmatprep.mubr.msk.f32.mxu0 %vm298_vm1, %v4658_v60 }
  0x63   : > { %4072 = vmatpush3.msk.msra.mxu0 %vm371_vm0, %v4482_v24  ;;  %v4749_v24 = vld [vmem:[%s4375_s5 + $0x90] sm:$0xff] }
  0x64   : > { %4109 = vmatprep.subr.msk.mxu0 %vm371_vm0, %v4721_v8 }
  0x65   : > { %3867 = vmatmul.mubr.msk.f32.gmra.mrb[32].mxu1 %vm298_vm1, %v4728_v9  ;;  %4039 = vmatmul.mubr.msk.f32.gmra.mrb[32].mxu0 %vm298_vm1, %v4672_v62 }
  0x66   : > { %3869 = vmatprep.mubr.msk.f32.mxu1 %vm298_vm1, %v4731_v10  ;;  %4041 = vmatprep.mubr.msk.f32.mxu0 %vm298_vm1, %v4678_v0 }
  0x69   : > { %3870 = vmatmul.mubr.msk.f32.gmra.mrb[34].mxu1 %vm298_vm1, %v4746_v11  ;;  %4042 = vmatmul.mubr.msk.f32.gmra.mrb[34].mxu0 %vm298_vm1, %v4692_v3 }
  0x6a   : > { %3872 = vmatprep.mubr.msk.f32.mxu1 %vm298_vm1, %v4749_v24  ;;  %4044 = vmatprep.mubr.msk.f32.mxu0 %vm298_vm1, %v4698_v5 }
  0x6d   : > { %3873 = vmatmul.mubr.msk.f32.gmra.mrb[18].mxu1 %vm298_vm1, %v4760_v43  ;;  %4045 = vmatmul.mubr.msk.f32.gmra.mrb[6].mxu0 %vm298_vm1, %v4709_v6 }
  0x6e   : > { %3875 = vmatprep.mubr.msk.f32.mxu1 %vm298_vm1, %v4763_v45  ;;  %4047 = vmatprep.mubr.msk.f32.mxu0 %vm298_vm1, %v4712_v7  ;;  %v3217_v7 = vld [vmem:[%s4375_s5 + $0x12] sm:$0xff] }
  0x71   : > { %3876 = vmatmul.mubr.msk.f32.gmra.mrb[36].mxu1 %vm298_vm1, %v4774_v47  ;;  %4048 = vmatmul.mubr.msk.f32.gmra.mrb[36].mxu0 %vm298_vm1, %v4728_v9  ;;  %v3216_v9 = vld [vmem:[%s4375_s5 + $0xa] sm:$0xff] }
  0x72   : > { %3878 = vmatprep.mubr.msk.f32.mxu1 %vm298_vm1, %v4777_v4  ;;  %4050 = vmatprep.mubr.msk.f32.mxu0 %vm298_vm1, %v4731_v10 }
  0x75   : > { %3879 = vmatmul.mubr.msk.f32.gmra.mrb[38].mxu1 %vm298_vm1, %v4788_v2  ;;  %4051 = vmatmul.mubr.msk.f32.gmra.mrb[38].mxu0 %vm298_vm1, %v4746_v11 }
  0x76   : > { %3883 = vmatprep.mubr.msk.f32.mxu1 %vm298_vm1, %v3215_v63  ;;  %4053 = vmatprep.mubr.msk.f32.mxu0 %vm298_vm1, %v4749_v24  ;;  %v3445_v63 = vld [vmem:[%s4375_s5 + $0xe0] sm:$0xff] }
  0x79   : > { %3884 = vmatmul.mubr.msk.f32.vlgmr.msra.gmra.mrb[0].mxu1 %vm298_vm1, %v3216_v9  ;;  %4054 = vmatmul.mubr.msk.f32.gmra.mrb[20].mxu0 %vm298_vm1, %v4760_v43 }
  0x7a   : > { %3920 = vmatpush3.msk.msra.mxu1 %vm371_vm0, %v4599_v49  ;;  %3886 = vmatprep.mubr.msk.f32.mxu1 %vm298_vm1, %v3217_v7  ;;  %v4819_v49 = vld [vmem:[%s4375_s5 + $0xc0] sm:$0xff]  ;;  %v3446_v7 = vld [vmem:[%s4375_s5 + $0xe8] sm:$0xff] }
  0x7b   : > { %4056 = vmatprep.mubr.msk.f32.mxu0 %vm298_vm1, %v4763_v45  ;;  %4147 = vmatprep.subr.msk.mxu1 %vm371_vm0, %v4352_v1 }
  0x7d   : > { %3887 = vmatmul.mubr.msk.f32.gmra.mrb[40].mxu1 %vm298_vm1, %v4459_v21  ;;  %4057 = vmatmul.mubr.msk.f32.gmra.mrb[40].mxu0 %vm298_vm1, %v4774_v47  ;;  %v4830_v21 = vld [vmem:[%s4375_s5 + $0xc8] sm:$0xff] }
  0x7e   : > { %3889 = vmatprep.mubr.msk.f32.mxu1 %vm298_vm1, %v4470_v22  ;;  %4059 = vmatprep.mubr.msk.f32.mxu0 %vm298_vm1, %v4777_v4  ;;  %v4833_v22 = vld [vmem:[%s4375_s5 + $0xd0] sm:$0xff] }
  0x81   : > { %3890 = vmatmul.mubr.msk.f32.gmra.mrb[42].mxu1 %vm298_vm1, %v4473_v23  ;;  %4060 = vmatmul.mubr.msk.f32.gmra.mrb[42].mxu0 %vm298_vm1, %v4788_v2  ;;  %v3444_v23 = vld [vmem:[%s4375_s5 + $0xd8] sm:$0xff] }
  0x82   : > { %3892 = vmatprep.mubr.msk.f32.mxu1 %vm298_vm1, %v4492_v26  ;;  %4062 = vmatprep.mubr.msk.f32.mxu0 %vm298_vm1, %v4819_v49 }
  0x85   : > { %3893 = vmatmul.mubr.msk.f32.gmra.mrb[6].mxu1 %vm298_vm1, %v4498_v28  ;;  %4063 = vmatmul.mubr.msk.f32.gmra.mrb[26].mxu0 %vm298_vm1, %v4830_v21 }
  0x86   : > { %3895 = vmatprep.mubr.msk.f32.mxu1 %vm298_vm1, %v4515_v30  ;;  %4065 = vmatprep.mubr.msk.f32.mxu0 %vm298_vm1, %v4833_v22 }
  0x89   : > { %3896 = vmatmul.mubr.msk.f32.gmra.mrb[44].mxu1 %vm298_vm1, %v4521_v32  ;;  %4066 = vmatmul.mubr.msk.f32.gmra.mrb[44].mxu0 %vm298_vm1, %v3444_v23 }
  0x8a   : > { %3898 = vmatprep.mubr.msk.f32.mxu1 %vm298_vm1, %v4535_v34  ;;  %4068 = vmatprep.mubr.msk.f32.mxu0 %vm298_vm1, %v3445_v63 }
  0x8d   : > { %3899 = vmatmul.mubr.msk.f32.gmra.mrb[46].mxu1 %vm298_vm1, %v4541_v36  ;;  %4069 = vmatmul.mubr.msk.f32.gmra.mrb[46].mxu0 %vm298_vm1, %v3446_v7 }
  0x8e   : > { %3901 = vmatprep.mubr.msk.f32.mxu1 %vm298_vm1, %v4555_v38  ;;  %4073 = vmatprep.mubr.msk.f32.mxu0 %vm298_vm1, %v4398_v12  ;;  %v3494_v12 = vld [vmem:[%s4375_s5 + $0xc9] sm:$0xff] }
  0x91   : > { %3902 = vmatmul.mubr.msk.f32.gmra.mrb[12].mxu1 %vm298_vm1, %v4561_v40  ;;  %4074 = vmatmul.mubr.msk.f32.vlgmr.msra.gmra.mrb[0].mxu0 %vm298_vm1, %v4402_v13  ;;  %v4940_v13 = vld [vmem:[%s4375_s5 + $0xd1] sm:$0xff] }
  0x92   : > { %3904 = vmatprep.mubr.msk.f32.mxu1 %vm298_vm1, %v4575_v42  ;;  %4076 = vmatprep.mubr.msk.f32.mxu0 %vm298_vm1, %v4415_v14  ;;  %v3496_v14 = vld [vmem:[%s4375_s5 + $0xd9] sm:$0xff] }
  0x93   : > { %4110 = vmatpush3.msk.msra.mxu0 %vm371_vm0, %v4721_v8 }
  0x95   : > { %3905 = vmatmul.mubr.msk.f32.gmra.mrb[48].mxu1 %vm298_vm1, %v4579_v44  ;;  %4077 = vmatmul.mubr.msk.f32.gmra.mrb[48].mxu0 %vm298_vm1, %v4418_v15  ;;  %v3497_v15 = vld [vmem:[%s4375_s5 + $0xe1] sm:$0xff] }
  0x96   : > { %3907 = vmatprep.mubr.msk.f32.mxu1 %vm298_vm1, %v4590_v46  ;;  %4079 = vmatprep.mubr.msk.f32.mxu0 %vm298_vm1, %v4428_v16  ;;  %v3498_v16 = vld [vmem:[%s4375_s5 + $0xe9] sm:$0xff] }
  0x99   : > { %3908 = vmatmul.mubr.msk.f32.gmra.mrb[50].mxu1 %vm298_vm1, %v4594_v48  ;;  %4080 = vmatmul.mubr.msk.f32.gmra.mrb[50].mxu0 %vm298_vm1, %v4431_v17  ;;  %v5250_v17 = vld [vmem:[#allocation5_spill] sm:$0xff] }
  0x9a   : > { %3910 = vmatprep.mubr.msk.f32.mxu1 %vm298_vm1, %v4611_v51  ;;  %4082 = vmatprep.mubr.msk.f32.mxu0 %vm298_vm1, %v4442_v18  ;;  %v5251_v18 = vld [vmem:[#allocation6_spill] sm:$0xff] }
  0x9d   : > { %3911 = vmatmul.mubr.msk.f32.gmra.mrb[18].mxu1 %vm298_vm1, %v4619_v53  ;;  %4083 = vmatmul.mubr.msk.f32.gmra.mrb[6].mxu0 %vm298_vm1, %v4445_v19  ;;  %v5252_v19 = vld [vmem:[#allocation2_spill] sm:$0xff] }
  0x9e   : > { %3913 = vmatprep.mubr.msk.f32.mxu1 %vm298_vm1, %v4635_v55  ;;  %4085 = vmatprep.mubr.msk.f32.mxu0 %vm298_vm1, %v4456_v20  ;;  %v5253_v20 = vld [vmem:[#allocation3_spill] sm:$0xff] }
  0xa1   : > { %3914 = vmatmul.mubr.msk.f32.gmra.mrb[52].mxu1 %vm298_vm1, %v4641_v57  ;;  %4086 = vmatmul.mubr.msk.f32.gmra.mrb[52].mxu0 %vm298_vm1, %v4489_v25 }
  0xa2   : > { %3916 = vmatprep.mubr.msk.f32.mxu1 %vm298_vm1, %v4655_v59  ;;  %4088 = vmatprep.mubr.msk.f32.mxu0 %vm298_vm1, %v4495_v27 }
  0xa5   : > { %3917 = vmatmul.mubr.msk.f32.gmra.mrb[54].mxu1 %vm298_vm1, %v4661_v61  ;;  %4089 = vmatmul.mubr.msk.f32.gmra.mrb[54].mxu0 %vm298_vm1, %v4512_v29 }
  0xa6   : > { %3921 = vmatprep.mubr.msk.f32.mxu1 %vm298_vm1, %v4608_v50  ;;  %4091 = vmatprep.mubr.msk.f32.mxu0 %vm298_vm1, %v4518_v31 }
  0xa9   : > { %3922 = vmatmul.mubr.msk.f32.vlgmr.msra.gmra.mrb[0].mxu1 %vm298_vm1, %v4616_v52  ;;  %4092 = vmatmul.mubr.msk.f32.gmra.mrb[20].mxu0 %vm298_vm1, %v4532_v33 }
  0xaa   : > { %4148 = vmatpush3.msk.msra.mxu1 %vm371_vm0, %v4352_v1  ;;  %3924 = vmatprep.mubr.msk.f32.mxu1 %vm298_vm1, %v4632_v54  ;;  %v4928_v1 = vld [vmem:[%s4375_s5 + $0xc1] sm:$0xff] }
  0xab   : > { %4094 = vmatprep.mubr.msk.f32.mxu0 %vm298_vm1, %v4538_v35 }
  0xad   : > { %3925 = vmatmul.mubr.msk.f32.gmra.mrb[56].mxu1 %vm298_vm1, %v4638_v56  ;;  %4095 = vmatmul.mubr.msk.f32.gmra.mrb[56].mxu0 %vm298_vm1, %v4552_v37 }
  0xae   : > { %3927 = vmatprep.mubr.msk.f32.mxu1 %vm298_vm1, %v4652_v58  ;;  %4097 = vmatprep.mubr.msk.f32.mxu0 %vm298_vm1, %v4558_v39 }
  0xb1   : > { %3928 = vmatmul.mubr.msk.f32.gmra.mrb[58].mxu1 %vm298_vm1, %v4658_v60  ;;  %4098 = vmatmul.mubr.msk.f32.gmra.mrb[58].mxu0 %vm298_vm1, %v4572_v41 }
  0xb2   : > { %3930 = vmatprep.mubr.msk.f32.mxu1 %vm298_vm1, %v4672_v62  ;;  %4100 = vmatprep.mubr.msk.f32.mxu0 %vm298_vm1, %v4928_v1 }
  0xb5   : > { %3931 = vmatmul.mubr.msk.f32.gmra.mrb[6].mxu1 %vm298_vm1, %v4678_v0  ;;  %4101 = vmatmul.mubr.msk.f32.gmra.mrb[26].mxu0 %vm298_vm1, %v3494_v12 }
  0xb6   : > { %3933 = vmatprep.mubr.msk.f32.mxu1 %vm298_vm1, %v4692_v3  ;;  %4103 = vmatprep.mubr.msk.f32.mxu0 %vm298_vm1, %v4940_v13 }
  0xb9   : > { %3934 = vmatmul.mubr.msk.f32.gmra.mrb[60].mxu1 %vm298_vm1, %v4698_v5  ;;  %4104 = vmatmul.mubr.msk.f32.gmra.mrb[60].mxu0 %vm298_vm1, %v3496_v14 }
  0xba   : > { %3936 = vmatprep.mubr.msk.f32.mxu1 %vm298_vm1, %v4709_v6  ;;  %4106 = vmatprep.mubr.msk.f32.mxu0 %vm298_vm1, %v3497_v15 }
  0xbd   : > { %3937 = vmatmul.mubr.msk.f32.gmra.mrb[62].mxu1 %vm298_vm1, %v5250_v17  ;;  %4107 = vmatmul.mubr.msk.f32.gmra.mrb[62].mxu0 %vm298_vm1, %v3498_v16 }
  0xbe   : > { %3939 = vmatprep.mubr.msk.f32.mxu1 %vm298_vm1, %v5251_v18  ;;  %4111 = vmatprep.mubr.msk.f32.mxu0 %vm298_vm1, %v4492_v26  ;;  %v3548_v26 = vld [vmem:[%s4375_s5 + $0xda] sm:$0xff] }
  0xc1   : > { %3940 = vmatmul.mubr.msk.f32.gmra.mrb[12].mxu1 %vm298_vm1, %v4731_v10  ;;  %4112 = vmatmul.mubr.msk.f32.vlgmr.msra.gmra.mrb[0].mxu0 %vm298_vm1, %v4498_v28  ;;  %v3550_v28 = vld [vmem:[%s4375_s5 + $0xea] sm:$0xff] }
  0xc2   : > { %3942 = vmatprep.mubr.msk.f32.mxu1 %vm298_vm1, %v4746_v11  ;;  %4114 = vmatprep.mubr.msk.f32.mxu0 %vm298_vm1, %v4515_v30 }
  0xc5   : > { %3943 = vmatmul.mubr.msk.f32.gmra.mrb[64].mxu1 %vm298_vm1, %v4749_v24  ;;  %4115 = vmatmul.mubr.msk.f32.gmra.mrb[64].mxu0 %vm298_vm1, %v4521_v32 }
  0xc6   : > { %3945 = vmatprep.mubr.msk.f32.mxu1 %vm298_vm1, %v4760_v43  ;;  %4117 = vmatprep.mubr.msk.f32.mxu0 %vm298_vm1, %v4535_v34 }
  0xc9   : > { %3946 = vmatmul.mubr.msk.f32.gmra.mrb[66].mxu1 %vm298_vm1, %v4763_v45  ;;  %4118 = vmatmul.mubr.msk.f32.gmra.mrb[66].mxu0 %vm298_vm1, %v4541_v36 }
  0xca   : > { %3948 = vmatprep.mubr.msk.f32.mxu1 %vm298_vm1, %v4774_v47  ;;  %4120 = vmatprep.mubr.msk.f32.mxu0 %vm298_vm1, %v4555_v38 }
  0xcd   : > { %3949 = vmatmul.mubr.msk.f32.gmra.mrb[18].mxu1 %vm298_vm1, %v4777_v4  ;;  %4121 = vmatmul.mubr.msk.f32.gmra.mrb[6].mxu0 %vm298_vm1, %v4561_v40 }
  0xce   : > { %3951 = vmatprep.mubr.msk.f32.mxu1 %vm298_vm1, %v4788_v2  ;;  %4123 = vmatprep.mubr.msk.f32.mxu0 %vm298_vm1, %v4575_v42 }
  0xd1   : > { %3952 = vmatmul.mubr.msk.f32.gmra.mrb[68].mxu1 %vm298_vm1, %v4819_v49  ;;  %4124 = vmatmul.mubr.msk.f32.gmra.mrb[68].mxu0 %vm298_vm1, %v4579_v44 }
  0xd2   : > { %3954 = vmatprep.mubr.msk.f32.mxu1 %vm298_vm1, %v4830_v21  ;;  %4126 = vmatprep.mubr.msk.f32.mxu0 %vm298_vm1, %v4590_v46 }
  0xd5   : > { %3955 = vmatmul.mubr.msk.f32.gmra.mrb[70].mxu1 %vm298_vm1, %v4833_v22  ;;  %4127 = vmatmul.mubr.msk.f32.gmra.mrb[70].mxu0 %vm298_vm1, %v4594_v48 }
  0xd6   : > { %3977 = vmatprep.mubr.msk.f32.mxu1 %vm298_vm1, %v4489_v25  ;;  %4129 = vmatprep.mubr.msk.f32.mxu0 %vm298_vm1, %v4611_v51  ;;  %v5254_v25 = vld [vmem:[#allocation4_spill] sm:$0xff] }
  0xd9   : > { %3978 = vmatmul.mubr.msk.f32.vlgmr.msra.gmra.mrb[12].mxu1 %vm298_vm1, %v4495_v27  ;;  %4130 = vmatmul.mubr.msk.f32.gmra.mrb[20].mxu0 %vm298_vm1, %v4619_v53  ;;  %v3549_v27 = vld [vmem:[%s4375_s5 + $0xe2] sm:$0xff] }
  0xda   : > { %3980 = vmatprep.mubr.msk.f32.mxu1 %vm298_vm1, %v4512_v29  ;;  %4132 = vmatprep.mubr.msk.f32.mxu0 %vm298_vm1, %v4635_v55 }
  0xdd   : > { %3981 = vmatmul.mubr.msk.f32.gmra.mrb[72].mxu1 %vm298_vm1, %v4518_v31  ;;  %4133 = vmatmul.mubr.msk.f32.gmra.mrb[72].mxu0 %vm298_vm1, %v4641_v57 }
  0xde   : > { %3983 = vmatprep.mubr.msk.f32.mxu1 %vm298_vm1, %v4532_v33  ;;  %4135 = vmatprep.mubr.msk.f32.mxu0 %vm298_vm1, %v4655_v59 }
  0xe1   : > { %3984 = vmatmul.mubr.msk.f32.gmra.mrb[74].mxu1 %vm298_vm1, %v4538_v35  ;;  %4136 = vmatmul.mubr.msk.f32.gmra.mrb[74].mxu0 %vm298_vm1, %v4661_v61 }
  0xe2   : > { %3986 = vmatprep.mubr.msk.f32.mxu1 %vm298_vm1, %v4552_v37  ;;  %4138 = vmatprep.mubr.msk.f32.mxu0 %vm298_vm1, %v5252_v19 }
  0xe5   : > { %3987 = vmatmul.mubr.msk.f32.gmra.mrb[18].mxu1 %vm298_vm1, %v4558_v39  ;;  %4139 = vmatmul.mubr.msk.f32.gmra.mrb[26].mxu0 %vm298_vm1, %v5253_v20 }
  0xe6   : > { %3989 = vmatprep.mubr.msk.f32.mxu1 %vm298_vm1, %v4572_v41  ;;  %4141 = vmatprep.mubr.msk.f32.mxu0 %vm298_vm1, %v5254_v25 }
  0xe9   : > { %3990 = vmatmul.mubr.msk.f32.gmra.mrb[76].mxu1 %vm298_vm1, %v4928_v1  ;;  %4142 = vmatmul.mubr.msk.f32.gmra.mrb[76].mxu0 %vm298_vm1, %v3548_v26 }
  0xea   : > { %3992 = vmatprep.mubr.msk.f32.mxu1 %vm298_vm1, %v3494_v12  ;;  %4144 = vmatprep.mubr.msk.f32.mxu0 %vm298_vm1, %v3549_v27 }
  0xed   : > { %3993 = vmatmul.mubr.msk.f32.gmra.mrb[78].mxu1 %vm298_vm1, %v4940_v13  ;;  %4145 = vmatmul.mubr.msk.f32.gmra.mrb[78].mxu0 %vm298_vm1, %v3550_v28 }
  0xf0   : > { %v3812_v29 = vpop.f32.mrb[2].mxu1  ;;  %v5056_v30 = vpop.f32.mrb[2].mxu0 }
  0xf1   : > { %v451_v31 = vpop.f32.mrb[3].mxu1  ;;  %v1576_v32 = vpop.f32.mrb[3].mxu0 }
  0xf4   : > { %v3815_v33 = vpop.f32.mrb[4].mxu1  ;;  %v3967_v34 = vpop.f32.mrb[4].mxu0 }
  0xf5   : > { %v460_v35 = vpop.f32.mrb[5].mxu1  ;;  %v5058_v36 = vpop.f32.mrb[5].mxu0 }
  0xfc   : > { %v3821_v37 = vpop.f32.mrb[8].mxu1  ;;  %v5060_v38 = vpop.f32.mrb[8].mxu0 }
  0xfd   : > { %v479_v39 = vpop.f32.mrb[9].mxu1  ;;  %v1604_v40 = vpop.f32.mrb[9].mxu0 }
 0x100   : > { %v3824_v41 = vpop.f32.mrb[10].mxu1  ;;  %v3976_v42 = vpop.f32.mrb[10].mxu0 }
 0x101   : > { %v488_v44 = vpop.f32.mrb[11].mxu1  ;;  %v5062_v46 = vpop.f32.mrb[11].mxu0 }
 0x108   : > { %v3830_v48 = vpop.f32.mrb[14].mxu1  ;;  %v5064_v50 = vpop.f32.mrb[12].mxu0 }
 0x109   : > { %v507_v51 = vpop.f32.mrb[15].mxu1  ;;  %v1872_v52 = vpop.f32.mrb[13].mxu0 }
 0x10c   : > { %v3833_v53 = vpop.f32.mrb[16].mxu1  ;;  %v4005_v54 = vpop.f32.mrb[14].mxu0 }
 0x10d   : > { %v516_v55 = vpop.f32.mrb[17].mxu1  ;;  %v5066_v56 = vpop.f32.mrb[15].mxu0 }
 0x114   : > { %v3839_v57 = vpop.f32.mrb[20].mxu1  ;;  %v5068_v58 = vpop.f32.mrb[16].mxu0 }
 0x115   : > { %v535_v59 = vpop.f32.mrb[21].mxu1  ;;  %v1900_v60 = vpop.f32.mrb[17].mxu0 }
 0x118   : > { %v3842_v61 = vpop.f32.mrb[22].mxu1  ;;  %v4014_v62 = vpop.f32.mrb[18].mxu0 }
 0x119   : > { %v544_v0 = vpop.f32.mrb[23].mxu1  ;;  %v5070_v2 = vpop.f32.mrb[19].mxu0 }
 0x120   : > { %v3850_v3 = vpop.f32.mrb[24].mxu1  ;;  %v5072_v4 = vpop.f32.mrb[22].mxu0 }
 0x121   : > { %v708_v5 = vadd.f32 %v3850_v3, %v3812_v29  ;;  %v703_v6 = vpop.f32.mrb[25].mxu1  ;;  %v1928_v8 = vpop.f32.mrb[23].mxu0 }
 0x124   : > { %v3853_v9 = vpop.f32.mrb[26].mxu1  ;;  %v4023_v10 = vpop.f32.mrb[24].mxu0 }
 0x125   : > { %v712_v11 = vpop.f32.mrb[27].mxu1  ;;  %v5074_v24 = vpop.f32.mrb[25].mxu0 }
 0x126   : > { %v713_v43 = vadd.f32 %v712_v11, %v460_v35 }
 0x12c   : > { %v3859_v45 = vpop.f32.mrb[28].mxu1  ;;  %v5076_v47 = vpop.f32.mrb[28].mxu0 }
 0x12d   : > { %v736_v49 = vadd.f32 %v3859_v45, %v3821_v37  ;;  %v731_v21 = vpop.f32.mrb[29].mxu1  ;;  %v1956_v22 = vpop.f32.mrb[29].mxu0 }
 0x130   : > { %v3862_v23 = vpop.f32.mrb[30].mxu1  ;;  %v4032_v63 = vpop.f32.mrb[30].mxu0 }
 0x131   : > { %v740_v7 = vpop.f32.mrb[31].mxu1  ;;  %v5078_v1 = vpop.f32.mrb[31].mxu0 }
 0x132   : > { %v741_v12 = vadd.f32 %v740_v7, %v488_v44 }
 0x138   : > { %v3868_v13 = vpop.f32.mrb[32].mxu1  ;;  %v5080_v14 = vpop.f32.mrb[32].mxu0 }
 0x139   : > { %v764_v15 = vadd.f32 %v3868_v13, %v3830_v48  ;;  %v759_v16 = vpop.f32.mrb[33].mxu1  ;;  %v2169_v17 = vpop.f32.mrb[33].mxu0 }
 0x13c   : > { %v3871_v18 = vpop.f32.mrb[34].mxu1  ;;  %v4043_v19 = vpop.f32.mrb[34].mxu0 }
 0x13d   : > { %v768_v20 = vpop.f32.mrb[35].mxu1  ;;  %v5082_v25 = vpop.f32.mrb[35].mxu0 }
 0x13e   : > { %v769_v26 = vadd.f32 %v768_v20, %v516_v55 }
 0x144   : > { %v3877_v27 = vpop.f32.mrb[36].mxu1  ;;  %v5084_v28 = vpop.f32.mrb[36].mxu0 }
 0x145   : > { %v792_v29 = vadd.f32 %v3877_v27, %v3839_v57  ;;  %v787_v31 = vpop.f32.mrb[37].mxu1  ;;  %v2197_v32 = vpop.f32.mrb[37].mxu0 }
 0x148   : > { %v3880_v33 = vpop.f32.mrb[38].mxu1  ;;  %v4052_v34 = vpop.f32.mrb[38].mxu0 }
 0x149   : > { %v796_v35 = vpop.f32.mrb[39].mxu1  ;;  %v5086_v37 = vpop.f32.mrb[39].mxu0 }
 0x14a   : > { %v797_v39 = vadd.f32 %v796_v35, %v544_v0 }
 0x150   : > { %v3888_v40 = vpop.f32.mrb[40].mxu1  ;;  %v5088_v41 = vpop.f32.mrb[40].mxu0 }
 0x151   : > { %v1086_v42 = vadd.f32 %v3888_v40, %v708_v5  ;;  %v983_v44 = vpop.f32.mrb[41].mxu1  ;;  %v2225_v48 = vpop.f32.mrb[41].mxu0 }
 0x154   : > { %v3891_v51 = vpop.f32.mrb[42].mxu1  ;;  %v4061_v52 = vpop.f32.mrb[42].mxu0 }
 0x155   : > { %v992_v53 = vpop.f32.mrb[43].mxu1  ;;  %v5090_v54 = vpop.f32.mrb[43].mxu0 }
 0x156   : > { %v1087_v55 = vadd.f32 %v992_v53, %v713_v43 }
 0x15c   : > { %v3897_v57 = vpop.f32.mrb[44].mxu1  ;;  %v5092_v59 = vpop.f32.mrb[44].mxu0 }
 0x15d   : > { %v1090_v60 = vadd.f32 %v3897_v57, %v736_v49  ;;  %v1011_v61 = vpop.f32.mrb[45].mxu1  ;;  %v2253_v62 = vpop.f32.mrb[45].mxu0 }
 0x160   : > { %v3900_v3 = vpop.f32.mrb[46].mxu1  ;;  %v4070_v0 = vpop.f32.mrb[46].mxu0 }
 0x161   : > { %v1020_v6 = vpop.f32.mrb[47].mxu1  ;;  %v5094_v8 = vpop.f32.mrb[47].mxu0 }
 0x162   : > { %v1091_v5 = vadd.f32 %v1020_v6, %v741_v12 }
 0x168   : > { %v3906_v9 = vpop.f32.mrb[48].mxu1  ;;  %v4078_v10 = vpop.f32.mrb[48].mxu0 }
 0x169   : > { %v5096_v11 = vadd.f32 %v3906_v9, %v764_v15  ;;  %v1039_v45 = vpop.f32.mrb[49].mxu1  ;;  %v2465_v21 = vpop.f32.mrb[49].mxu0 }
 0x16c   : > { %v3909_v22 = vpop.f32.mrb[50].mxu1  ;;  %v4081_v43 = vpop.f32.mrb[50].mxu0 }
 0x16d   : > { %v1048_v23 = vpop.f32.mrb[51].mxu1  ;;  %v2474_v63 = vpop.f32.mrb[51].mxu0 }
 0x16e   : > { %v5098_v7 = vadd.f32 %v1048_v23, %v769_v26 }
 0x174   : > { %v3915_v49 = vpop.f32.mrb[52].mxu1  ;;  %v4087_v13 = vpop.f32.mrb[52].mxu0 }
 0x175   : > { %v5100_v16 = vadd.f32 %v3915_v49, %v792_v29  ;;  %v1067_v17 = vpop.f32.mrb[53].mxu1  ;;  %v2493_v18 = vpop.f32.mrb[53].mxu0 }
 0x178   : > { %v3918_v19 = vpop.f32.mrb[54].mxu1  ;;  %v4090_v12 = vpop.f32.mrb[54].mxu0 }
 0x179   : > { %v1076_v20 = vpop.f32.mrb[55].mxu1  ;;  %v5102_v15 = vpop.f32.mrb[55].mxu0 }
 0x17a   : > { %v5104_v27 = vadd.f32 %v1076_v20, %v797_v39 }
 0x17c   : > { %v3923_v31 = vpop.f32.mrb[0].mxu1 }
 0x17d   : > { %v1270_v32 = vpop.f32.mrb[1].mxu1 }
 0x180   : > { %v3926_v33 = vpop.f32.mrb[56].mxu1  ;;  %v5106_v34 = vpop.f32.mrb[56].mxu0 }
 0x181   : > { %v1383_v26 = vadd.f32 %v3926_v33, %v1086_v42  ;;  %v1280_v35 = vpop.f32.mrb[57].mxu1  ;;  %v2521_v40 = vpop.f32.mrb[57].mxu0 }
 0x183   : > { %v1679_v29 = vadd.f32 %v5056_v30, %v1383_v26 }
 0x184   : > { %v3929_v44 = vpop.f32.mrb[58].mxu1  ;;  %v4099_v48 = vpop.f32.mrb[58].mxu0 }
 0x185   : > { %v1975_v51 = vadd.f32 %v5064_v50, %v1679_v29  ;;  %v1289_v52 = vpop.f32.mrb[59].mxu1  ;;  %v5110_v53 = vpop.f32.mrb[59].mxu0 }
 0x186   : > { %v1384_v39 = vadd.f32 %v1289_v52, %v1087_v55 }
 0x187   : > { %v2272_v57 = vadd.f32 %v5080_v14, %v1975_v51 }
 0x188   : > { %v1680_v61 = vadd.f32 %v5058_v36, %v1384_v39  ;;  %v5115_v62 = vpop.f32.mrb[6].mxu1 }
 0x189   : > { %v5117_v42 = vpop.f32.mrb[7].mxu1  ;;  %v2568_v30 = vadd.f32 %v4078_v10, %v2272_v57 }
 0x18a   : > { %v1976_v3 = vadd.f32 %v5066_v56, %v1680_v61 }
 0x18c   : > { %v3935_v0 = vpop.f32.mrb[60].mxu1  ;;  %v5120_v50 = vpop.f32.mrb[60].mxu0  ;;  %v2273_v6 = vadd.f32 %v5082_v25, %v1976_v3 }
 0x18d   : > { %v1387_v55 = vadd.f32 %v3935_v0, %v1090_v60  ;;  %v1308_v9 = vpop.f32.mrb[61].mxu1  ;;  %v2549_v14 = vpop.f32.mrb[61].mxu0 }
 0x18e   : > { %v2569_v45 = vadd.f32 %v2474_v63, %v2273_v6 }
 0x18f   : > { %v1683_v36 = vadd.f32 %v5060_v38, %v1387_v55  ;;  %v5133_v38 = vld [vmem:[%s5238_s2] ss:$0 sm:$0xff] }
 0x190   : > { %v3938_v21 = vpop.f32.mrb[62].mxu1  ;;  %v4108_v22 = vpop.f32.mrb[62].mxu0 }
 0x191   : > { %v1979_v10 = vadd.f32 %v5068_v58, %v1683_v36  ;;  %v1317_v43 = vpop.f32.mrb[63].mxu1  ;;  %v5126_v56 = vpop.f32.mrb[63].mxu0 }
 0x192   : > { %v1388_v23 = vadd.f32 %v1317_v43, %v1091_v5 }
 0x193   : > { %v2276_v49 = vadd.f32 %v5084_v28, %v1979_v10 }
 0x194   : > { %v1684_v25 = vadd.f32 %v5062_v46, %v1388_v23  ;;  %v4113_v60 = vpop.f32.mrb[0].mxu0 }
 0x195   : > { %v4149_v63 = vadd.f32 %v4113_v60, %v3923_v31  ;;  %v2751_v17 = vpop.f32.mrb[1].mxu0  ;;  %v2572_v18 = vadd.f32 %v4087_v13, %v2276_v49 }
 0x196   : > { %v1980_v58 = vadd.f32 %v5070_v2, %v1684_v25  ;;  %v4150_v19 = vadd.f32 %v2751_v17, %v1270_v32 }
 0x197   : > { %v2886_v5 = vadd.f32 %v4149_v63, %v5133_v38 }
 0x198   : > { %v2885_v28 = vadd.f32 %v4150_v19, %v5133_v38  ;;  %v3944_v12 = vpop.f32.mrb[64].mxu1  ;;  %v4116_v46 = vpop.f32.mrb[64].mxu0  ;;  %v2277_v20 = vadd.f32 %v5086_v37, %v1980_v58 }
 0x199   : > { %vm2902_vm3 = vcmp.ge.f32.partialorder %v2886_v5, 0.0  ;;  %v2918_v2 = vmul.f32 0.01, %v2886_v5  ;;  %v5145_v13 = vadd.f32 %v3944_v12, %v5096_v11  ;;  %v2864_v31 = vadd.f32 %v4116_v46, %v2568_v30  ;;  %v1336_v32 = vpop.f32.mrb[65].mxu1  ;;  %v2761_v33 = vpop.f32.mrb[65].mxu0 }
 0x19a   : > { %vm2901_vm4 = vcmp.ge.f32.partialorder %v2885_v28, 0.0  ;;  %v2917_v26 = vmul.f32 0.01, %v2885_v28  ;;  %v2573_v37 = vadd.f32 %v5102_v15, %v2277_v20 }
 0x19b   : > { %v2934_v35 = vsel %vm2902_vm3, %v2886_v5, %v2918_v2  ;;  %v2887_v40 = vadd.f32 %v5133_v38, %v2864_v31 }
 0x19c   : > { %2951 = vst.msk [vmem:[%s5142_s30 + $0x8] sm:$0xff] %vm2949_vm2, %v2934_v35  ;;  %v2933_v29 = vsel %vm2901_vm4, %v2885_v28, %v2917_v26  ;;  %v3947_v44 = vpop.f32.mrb[66].mxu1  ;;  %v4119_v48 = vpop.f32.mrb[66].mxu0 }
 0x19d   : > { %2950 = vst.msk [vmem:[%s5142_s30] sm:$0xff] %vm2949_vm2, %v2933_v29  ;;  %vm2903_vm5 = vcmp.ge.f32.partialorder %v2887_v40, 0.0  ;;  %v2919_v11 = vmul.f32 0.01, %v2887_v40  ;;  %v1345_v51 = vpop.f32.mrb[67].mxu1  ;;  %v2770_v52 = vpop.f32.mrb[67].mxu0 }
 0x19e   : > { %v5154_v39 = vadd.f32 %v1345_v51, %v5098_v7  ;;  %v2865_v57 = vadd.f32 %v2770_v52, %v2569_v45 }
 0x19f   : > { %v2935_v15 = vsel %vm2903_vm5, %v2887_v40, %v2919_v11 }
 0x1a0   : > { %2952 = vst.msk [vmem:[%s5142_s30 + $0x10] sm:$0xff] %vm2949_vm2, %v2935_v15  ;;  %v2888_v61 = vadd.f32 %v5133_v38, %v2865_v57  ;;  %v4122_v30 = vpop.f32.mrb[6].mxu0 }
 0x1a1   : > { %v4151_v3 = vadd.f32 %v4122_v30, %v5115_v62  ;;  %v2779_v0 = vpop.f32.mrb[7].mxu0 }
 0x1a2   : > { %vm2904_vm6 = vcmp.ge.f32.partialorder %v2888_v61, 0.0  ;;  %v2920_v6 = vmul.f32 0.01, %v2888_v61  ;;  %v4152_v55 = vadd.f32 %v2779_v0, %v5117_v42 }
 0x1a3   : > { %v2890_v9 = vadd.f32 %v4151_v3, %v5133_v38 }
 0x1a4   : > { %v2936_v7 = vsel %vm2904_vm6, %v2888_v61, %v2920_v6  ;;  %v2889_v14 = vadd.f32 %v4152_v55, %v5133_v38  ;;  %v3953_v45 = vpop.f32.mrb[68].mxu1  ;;  %v4125_v36 = vpop.f32.mrb[68].mxu0 }
 0x1a5   : > { %2953 = vst.msk [vmem:[%s5142_s30 + $0x18] sm:$0xff] %vm2949_vm2, %v2936_v7  ;;  %vm2906_vm7 = vcmp.ge.f32.partialorder %v2890_v9, 0.0  ;;  %v2922_v21 = vmul.f32 0.01, %v2890_v9  ;;  %v5166_v62 = vadd.f32 %v3953_v45, %v5100_v16  ;;  %v2868_v22 = vadd.f32 %v4125_v36, %v2572_v18  ;;  %v1364_v10 = vpop.f32.mrb[69].mxu1  ;;  %v2789_v43 = vpop.f32.mrb[69].mxu0 }
 0x1a6   : > { %vm2905_vm8 = vcmp.ge.f32.partialorder %v2889_v14, 0.0  ;;  %v2921_v42 = vmul.f32 0.01, %v2889_v14 }
 0x1a7   : > { %v2938_v23 = vsel %vm2906_vm7, %v2890_v9, %v2922_v21  ;;  %v2891_v49 = vadd.f32 %v5133_v38, %v2868_v22 }
 0x1a8   : > { %2955 = vst.msk [vmem:[%s5142_s30 + $0x28] sm:$0xff] %vm2949_vm2, %v2938_v23  ;;  %v2937_v25 = vsel %vm2905_vm8, %v2889_v14, %v2921_v42  ;;  %v3956_v60 = vpop.f32.mrb[70].mxu1  ;;  %v4128_v63 = vpop.f32.mrb[70].mxu0 }
 0x1a9   : > { %2954 = vst.msk [vmem:[%s5142_s30 + $0x20] sm:$0xff] %vm2949_vm2, %v2937_v25  ;;  %vm2907_vm9 = vcmp.ge.f32.partialorder %v2891_v49, 0.0  ;;  %v2923_v17 = vmul.f32 0.01, %v2891_v49  ;;  %v1373_v16 = vpop.f32.mrb[71].mxu1  ;;  %v2798_v58 = vpop.f32.mrb[71].mxu0 }
 0x1aa   : > { %v5174_v18 = vadd.f32 %v1373_v16, %v5104_v27  ;;  %v2869_v19 = vadd.f32 %v2798_v58, %v2573_v37 }
 0x1ab   : > { %v2939_v5 = vsel %vm2907_vm9, %v2891_v49, %v2923_v17 }
 0x1ac   : > { %2956 = vst.msk [vmem:[%s5142_s30 + $0x30] sm:$0xff] %vm2949_vm2, %v2939_v5  ;;  %v2892_v28 = vadd.f32 %v5133_v38, %v2869_v19  ;;  %v3979_v12 = vpop.f32.mrb[12].mxu1  ;;  %v4131_v46 = vpop.f32.mrb[20].mxu0 }
 0x1ad   : > { %v4153_v20 = vadd.f32 %v4131_v46, %v3979_v12  ;;  %v1622_v2 = vpop.f32.mrb[13].mxu1  ;;  %v2807_v31 = vpop.f32.mrb[21].mxu0 }
 0x1ae   : > { %vm2908_vm10 = vcmp.ge.f32.partialorder %v2892_v28, 0.0  ;;  %v2924_v32 = vmul.f32 0.01, %v2892_v28  ;;  %v4154_v33 = vadd.f32 %v2807_v31, %v1622_v2 }
 0x1af   : > { %v2894_v26 = vadd.f32 %v4153_v20, %v5133_v38 }
 0x1b0   : > { %v2940_v27 = vsel %vm2908_vm10, %v2892_v28, %v2924_v32  ;;  %v2893_v37 = vadd.f32 %v4154_v33, %v5133_v38  ;;  %v3982_v35 = vpop.f32.mrb[72].mxu1  ;;  %v4134_v40 = vpop.f32.mrb[72].mxu0 }
 0x1b1   : > { %2957 = vst.msk [vmem:[%s5142_s30 + $0x38] sm:$0xff] %vm2949_vm2, %v2940_v27  ;;  %vm2910_vm11 = vcmp.ge.f32.partialorder %v2894_v26, 0.0  ;;  %v2926_v29 = vmul.f32 0.01, %v2894_v26  ;;  %v1687_v44 = vadd.f32 %v3982_v35, %v5145_v13  ;;  %v1632_v48 = vpop.f32.mrb[73].mxu1  ;;  %v2817_v11 = vpop.f32.mrb[73].mxu0 }
 0x1b2   : > { %vm2909_vm12 = vcmp.ge.f32.partialorder %v2893_v37, 0.0  ;;  %v2925_v51 = vmul.f32 0.01, %v2893_v37 }
 0x1b3   : > { %v2942_v52 = vsel %vm2910_vm11, %v2894_v26, %v2926_v29  ;;  %v1983_v57 = vadd.f32 %v5072_v4, %v1687_v44 }
 0x1b4   : > { %2959 = vst.msk [vmem:[%s5142_s30 + $0x48] sm:$0xff] %vm2949_vm2, %v2942_v52  ;;  %v2941_v15 = vsel %vm2909_vm12, %v2893_v37, %v2925_v51  ;;  %v3985_v61 = vpop.f32.mrb[74].mxu1  ;;  %v4137_v30 = vpop.f32.mrb[74].mxu0 }
 0x1b5   : > { %2958 = vst.msk [vmem:[%s5142_s30 + $0x40] sm:$0xff] %vm2949_vm2, %v2941_v15  ;;  %v2280_v3 = vadd.f32 %v5088_v41, %v1983_v57  ;;  %v1641_v0 = vpop.f32.mrb[75].mxu1  ;;  %v2826_v6 = vpop.f32.mrb[75].mxu0 }
 0x1b6   : > { %v1688_v13 = vadd.f32 %v1641_v0, %v5154_v39 }
 0x1b7   : > { %v2576_v55 = vadd.f32 %v5106_v34, %v2280_v3 }
 0x1b8   : > { %v1984_v9 = vadd.f32 %v5074_v24, %v1688_v13  ;;  %v3988_v7 = vpop.f32.mrb[18].mxu1  ;;  %v4140_v14 = vpop.f32.mrb[26].mxu0 }
 0x1b9   : > { %v2872_v4 = vadd.f32 %v4134_v40, %v2576_v55  ;;  %v4155_v45 = vadd.f32 %v4140_v14, %v3988_v7  ;;  %v1650_v36 = vpop.f32.mrb[19].mxu1  ;;  %v2835_v21 = vpop.f32.mrb[27].mxu0 }
 0x1ba   : > { %v2281_v22 = vadd.f32 %v5090_v54, %v1984_v9  ;;  %v4156_v10 = vadd.f32 %v2835_v21, %v1650_v36 }
 0x1bb   : > { %v2895_v43 = vadd.f32 %v5133_v38, %v2872_v4  ;;  %v2898_v41 = vadd.f32 %v4155_v45, %v5133_v38 }
 0x1bc   : > { %v2577_v42 = vadd.f32 %v5110_v53, %v2281_v22  ;;  %v2897_v34 = vadd.f32 %v4156_v10, %v5133_v38  ;;  %v3991_v39 = vpop.f32.mrb[76].mxu1  ;;  %v4143_v24 = vpop.f32.mrb[76].mxu0 }
 0x1bd   : > { %vm2911_vm13 = vcmp.ge.f32.partialorder %v2895_v43, 0.0  ;;  %v2927_v23 = vmul.f32 0.01, %v2895_v43  ;;  %vm2914_vm14 = vcmp.ge.f32.partialorder %v2898_v41, 0.0  ;;  %v2930_v49 = vmul.f32 0.01, %v2898_v41 }
 0x1be   : > { %v2873_v25 = vadd.f32 %v2826_v6, %v2577_v42  ;;  %vm2913_vm15 = vcmp.ge.f32.partialorder %v2897_v34, 0.0  ;;  %v2929_v54 = vmul.f32 0.01, %v2897_v34  ;;  %v1691_v60 = vadd.f32 %v3991_v39, %v5166_v62  ;;  %v1660_v63 = vpop.f32.mrb[77].mxu1  ;;  %v2845_v17 = vpop.f32.mrb[77].mxu0 }
 0x1bf   : > { %v2943_v16 = vsel %vm2911_vm13, %v2895_v43, %v2927_v23  ;;  %v2946_v53 = vsel %vm2914_vm14, %v2898_v41, %v2930_v49 }
 0x1c0   : > { %2960 = vst.msk [vmem:[%s5142_s30 + $0x50] sm:$0xff] %vm2949_vm2, %v2943_v16  ;;  %v2896_v58 = vadd.f32 %v5133_v38, %v2873_v25  ;;  %2963 = vst.msk [vmem:[%s5142_s30 + $0x68] sm:$0xff] %vm2949_vm2, %v2946_v53  ;;  %v2945_v19 = vsel %vm2913_vm15, %v2897_v34, %v2929_v54  ;;  %v1987_v5 = vadd.f32 %v5076_v47, %v1691_v60  ;;  %v3994_v28 = vpop.f32.mrb[78].mxu1  ;;  %v4146_v12 = vpop.f32.mrb[78].mxu0 }
 0x1c1   : > { %2962 = vst.msk [vmem:[%s5142_s30 + $0x60] sm:$0xff] %vm2949_vm2, %v2945_v19  ;;  %v1669_v46 = vpop.f32.mrb[79].mxu1  ;;  %v2854_v62 = vpop.f32.mrb[79].mxu0 }
 0x1c2   : > { %vm2912_vm0 = vcmp.ge.f32.partialorder %v2896_v58, 0.0  ;;  %v2928_v20 = vmul.f32 0.01, %v2896_v58  ;;  %v1692_v2 = vadd.f32 %v1669_v46, %v5174_v18  ;;  %v2284_v31 = vadd.f32 %v5092_v59, %v1987_v5 }
 0x1c4   : > { %v2944_v32 = vsel %vm2912_vm0, %v2896_v58, %v2928_v20  ;;  %v1988_v33 = vadd.f32 %v5078_v1, %v1692_v2  ;;  %v2580_v26 = vadd.f32 %v5120_v50, %v2284_v31 }
 0x1c5   : > { %2961 = vst.msk [vmem:[%s5142_s30 + $0x58] sm:$0xff] %vm2949_vm2, %v2944_v32 }
 0x1c6   : > { %v2876_v47 = vadd.f32 %v4143_v24, %v2580_v26  ;;  %v2285_v27 = vadd.f32 %v5094_v8, %v1988_v33 }
 0x1c8   : > { %v2899_v37 = vadd.f32 %v5133_v38, %v2876_v47  ;;  %v2581_v35 = vadd.f32 %v5126_v56, %v2285_v27 }
 0x1ca   : > { %vm2915_vm1 = vcmp.ge.f32.partialorder %v2899_v37, 0.0  ;;  %v2931_v40 = vmul.f32 0.01, %v2899_v37  ;;  %v2877_v18 = vadd.f32 %v2854_v62, %v2581_v35 }
 0x1cc   : > { %v2947_v29 = vsel %vm2915_vm1, %v2899_v37, %v2931_v40  ;;  %v2900_v59 = vadd.f32 %v5133_v38, %v2877_v18 }
 0x1cd   : > { %2964 = vst.msk [vmem:[%s5142_s30 + $0x70] sm:$0xff] %vm2949_vm2, %v2947_v29 }
 0x1ce   : > { %vm2916_vm3 = vcmp.ge.f32.partialorder %v2900_v59, 0.0  ;;  %v2932_v1 = vmul.f32 0.01, %v2900_v59 }
 0x1d0   : > { %v2948_v50 = vsel %vm2916_vm3, %v2900_v59, %v2932_v1 }
 0x1d1   : > { %2965 = vst.msk [vmem:[%s5142_s30 + $0x78] sm:$0xff] %vm2949_vm2, %v2948_v50 }
 0x1d2 PF: > { %s13_s16 = sadd.s32 1, %s4292_s16   ;;  %s5255_s12 = smov %s4284_s14 }
 0x1d3   : > { %p10_p7 = scmp.ge.s32.totalorder %s13_s16, 6   ;;  %s5256_s13 = smov %s4288_s15 }
 0x1d4   : > { %s5257_s14 = smov %s5260_s17  ;;  %s5258_s15 = smov %s5264_s18 }
 0x1d5   :  { %12 = sbr.rel (!%p10_p7) target bundleno = 3 (0x3), region = 85 }

</bundles_post_ra>
